<compile_context>
chip_gen: v7x
topology: tpu7x:2x2x1
jax: 0.10.0
libtpu: 0.0.40
codegen_flags: <defaults>
</compile_context>

<pallas_src>
import math
from functools import partial

import jax
import jax.numpy as jnp
from jax.experimental import pallas as pl
from jax.experimental.pallas import tpu as pltpu


# ----------------------------- small helpers --------------------------------

def _round_up(a, m):
    return ((a + m - 1) // m) * m


def _gelu_tanh(x):
    # tanh-approximate GELU (f32); tanh executes on the EUP slot.
    c = 0.7978845608028654  # sqrt(2/pi)
    return 0.5 * x * (1.0 + jnp.tanh(c * (x + 0.044715 * x * x * x)))


def _vmem_capacity_bytes():
    try:
        return int(pltpu.get_tpu_info().vmem_capacity_bytes)
    except Exception:
        return 64 << 20  # conservative fallback (v7x per-TC VMEM)


def _auto_tiles(T, Vp, H, vmem_budget, out_itemsize):
    """Pick (tt, tv): biggest token tile first (amortizes E^T streaming), then the
    biggest vocab tile that fits the VMEM budget. tv must divide padded vocab."""

    def vmem_bytes(tt, tv):
        return (2 * tt * H * 2          # x tile, double-buffered bf16
                + H * H * 2             # Wd^T, resident (single buffer)
                + 2 * H * tv * 2        # E^T tile, double-buffered bf16
                + 2 * tt * tv * out_itemsize  # output tile, double-buffered
                + tt * H * 2            # cached transform scratch (bf16)
                + 8 * H * 4 + 4 * tv * 4      # small vectors
                + (2 << 20))            # slack for compiler scratch

    chosen = None
    for tt in (1024, 512, 256, 128, 64, 32, 16, 8):
        for tv in (4096, 2048, 1024, 512, 256, 128):
            if Vp % tv != 0:
                continue
            if vmem_bytes(tt, tv) <= vmem_budget:
                chosen = (tt, tv)
                break
        if chosen is not None:
            break
    if chosen is None:
        chosen = (8, 128)
    tt, tv = chosen

    # Keep both megacore TensorCores busy when the token count is small
    # (e.g. masked-positions-only MLM head): aim for grid[0] >= 2.
    if T <= tt:
        tt = max(8, _round_up(pl.cdiv(T, 2), 8)) if T > 8 else max(8, _round_up(T, 8))
    return tt, tv


# ------------------------------ the kernel ----------------------------------

def _mlm_head_kernel(x_ref, wd_ref, bd_ref, gamma_ref, beta_ref,
                     et_ref, db_ref, out_ref, h_scr):
    # ---- transform (dense + GELU + LayerNorm): computed once per token tile ----
    @pl.when(pl.program_id(1) == 0)
    def _():
        x = x_ref[...]                                               # (TT, H) bf16
        t = jnp.dot(x, wd_ref[...],
                    preferred_element_type=jnp.float32)              # bf16 x bf16 -> f32
        t = t + bd_ref[...]                                          # f32 bias
        t = _gelu_tanh(t)
        # one-pass LayerNorm statistics: var = E[t^2] - E[t]^2
        mean = jnp.mean(t, axis=-1, keepdims=True)
        m2 = jnp.mean(t * t, axis=-1, keepdims=True)
        var = m2 - mean * mean
        tn = (t - mean) * jax.lax.rsqrt(var + 1e-12)                 # eps = 1e-12
        h = tn * gamma_ref[...] + beta_ref[...]
        h_scr[...] = h.astype(jnp.bfloat16)                          # cache for all vocab tiles

    # ---- decoder projection onto the current vocab tile (lane-dense output) ----
    scores = jnp.dot(h_scr[...], et_ref[...],
                     preferred_element_type=jnp.float32) + db_ref[...]
    out_ref[...] = scores.astype(out_ref.dtype)


# ------------------------- one-time parameter prep ---------------------------

def prepare_mlm_head_params(params, *, vocab_pad_multiple=256,
                            compute_dtype=jnp.bfloat16):
    """One-time layout prep (do NOT call per-forward).

    params = (wd, bd, gamma, beta, emb_w, dec_bias), torch conventions:
      wd: (H, H) transform.dense.weight (out, in), bd: (H,)
      gamma/beta: (H,) LayerNorm weight/bias
      emb_w: (V, H) tied embedding weights (decoder.weight), dec_bias: (V,)
    """
    wd, bd, gamma, beta, emb_w, dec_bias = params
    H = wd.shape[0]
    V = emb_w.shape[0]
    Vp = _round_up(V, vocab_pad_multiple)

    et = emb_w.T.astype(compute_dtype)                    # (H, V): h @ et == h @ E^T
    db = dec_bias.astype(jnp.float32)
    if Vp != V:
        # zero embedding columns / zero bias for padded vocab entries
        et = jnp.pad(et, ((0, 0), (0, Vp - V)))
        db = jnp.pad(db, (0, Vp - V))

    prepared = {
        "wd_t": jax.block_until_ready(wd.T.astype(compute_dtype)),   # (H, H)
        "bd": bd.reshape(1, H).astype(jnp.float32),
        "gamma": gamma.reshape(1, H).astype(jnp.float32),
        "beta": beta.reshape(1, H).astype(jnp.float32),
        "et": jax.block_until_ready(et),                             # (H, Vp)
        "db": db.reshape(1, Vp),
        "H": H,
        "V": V,
        "Vp": Vp,
    }
    return prepared


# -------------------------------- wrapper ------------------------------------

def bert_only_mlm_head(x, prepared, *, tt=None, tv=None, out_dtype=jnp.float32):
    """x: (B, S, H) float32 sequence_output. Returns (B, S, V) prediction scores."""
    H = prepared["H"]
    V = prepared["V"]
    Vp = prepared["Vp"]
    B, S, Hx = x.shape
    assert Hx == H, "hidden size mismatch"
    T = B * S

    vmem_cap = _vmem_capacity_bytes()
    # explicit scoped-VMEM limit: ~56 MiB on v7x, ~100 MiB on v5e/v6e
    vmem_limit = max(32 << 20, min(vmem_cap - (8 << 20), 100 << 20))

    out_itemsize = jnp.dtype(out_dtype).itemsize
    if tt is None or tv is None:
        att, atv = _auto_tiles(T, Vp, H, vmem_limit, out_itemsize)
        tt = att if tt is None else tt
        tv = atv if tv is None else tv
    assert tt % 8 == 0, "token tile must be a multiple of 8"
    assert tv % 128 == 0 and Vp % tv == 0, "vocab tile must be lane-aligned and divide padded vocab"

    Tp = _round_up(T, tt)
    x2 = x.reshape(T, H).astype(prepared["wd_t"].dtype)
    if Tp != T:
        x2 = jnp.pad(x2, ((0, Tp - T), (0, 0)))

    grid = (Tp // tt, Vp // tv)

    def _run(single_buffer_resident):
        resident_kwargs = (
            dict(pipeline_mode=pl.Buffered(1)) if single_buffer_resident else {}
        )
        grid_spec = pltpu.PrefetchScalarGridSpec(
            num_scalar_prefetch=0,
            grid=grid,
            in_specs=[
                pl.BlockSpec((tt, H), lambda i, j: (i, 0)),                     # x (token tile)
                pl.BlockSpec((H, H), lambda i, j: (0, 0), **resident_kwargs),   # Wd^T (resident)
                pl.BlockSpec((1, H), lambda i, j: (0, 0), **resident_kwargs),   # bd
                pl.BlockSpec((1, H), lambda i, j: (0, 0), **resident_kwargs),   # gamma
                pl.BlockSpec((1, H), lambda i, j: (0, 0), **resident_kwargs),   # beta
                pl.BlockSpec((H, tv), lambda i, j: (0, j)),                     # E^T (vocab tile)
                pl.BlockSpec((1, tv), lambda i, j: (0, j)),                     # decoder bias tile
            ],
            out_specs=pl.BlockSpec((tt, tv), lambda i, j: (i, j)),
            scratch_shapes=[pltpu.VMEM((tt, H), jnp.bfloat16)],  # cached transform
        )
        return pl.pallas_call(
            _mlm_head_kernel,
            out_shape=jax.ShapeDtypeStruct((Tp, Vp), out_dtype),
            grid_spec=grid_spec,
            compiler_params=pltpu.CompilerParams(
                # token tiles independent (megacore-shardable); vocab axis must be
                # sequential so the cached transform in scratch stays valid.
                dimension_semantics=("parallel", "arbitrary"),
                vmem_limit_bytes=int(vmem_limit),
            ),
        )(x2, prepared["wd_t"], prepared["bd"], prepared["gamma"],
          prepared["beta"], prepared["et"], prepared["db"])

    try:
        out = jax.block_until_ready(_run(True))
    except Exception:
        # pipeline_mode=pl.Buffered(1) unsupported on this jax version -> default buffering
        out = jax.block_until_ready(_run(False))

    return out[:T, :V].reshape(B, S, V)


# ------------------------------ pure-JAX reference ---------------------------

def _reference(x, params):
    """Pure-JAX reference of the same forward pass (f32 throughout)."""
    wd, bd, gamma, beta, emb_w, dec_bias = params
    t = jnp.einsum('bsh,oh->bso', x, wd) + bd
    t = _gelu_tanh(t)
    mean = t.mean(-1, keepdims=True)
    var = ((t - mean) ** 2).mean(-1, keepdims=True)
    h = (t - mean) / jnp.sqrt(var + 1e-12) * gamma + beta
    return jnp.einsum('bsh,vh->bsv', h, emb_w) + dec_bias


# ----------------------------------- demo ------------------------------------

if __name__ == "__main__":
    # Small config: batch=2, seq=16, hidden=32, vocab=256.
    B, S, H, V = 2, 16, 32, 256

    key = jax.random.PRNGKey(0)
    ks = jax.random.split(key, 7)
    x = jax.random.normal(ks[0], (B, S, H), dtype=jnp.float32)

    wd = jax.random.normal(ks[1], (H, H), dtype=jnp.float32) * (1.0 / math.sqrt(H))
    bd = jax.random.normal(ks[2], (H,), dtype=jnp.float32) * 0.02
    gamma = 1.0 + 0.1 * jax.random.normal(ks[3], (H,), dtype=jnp.float32)
    beta = 0.02 * jax.random.normal(ks[4], (H,), dtype=jnp.float32)
    emb_w = jax.random.normal(ks[5], (V, H), dtype=jnp.float32) * 0.02   # tied embedding weights
    dec_bias = jax.random.normal(ks[6], (V,), dtype=jnp.float32) * 0.02

    params = (wd, bd, gamma, beta, emb_w, dec_bias)

    # One-time layout prep (transposes / bf16 casts / vocab padding hoisted here).
    prepared = prepare_mlm_head_params(params)

    ref = _reference(x, params)

    # 1) explicit tiles -> grid (2, 2): exercises the token-parallel axis and the
    #    cached-transform reuse across vocab tiles.
    out = bert_only_mlm_head(x, prepared, tt=16, tv=128)
    out = jax.block_until_ready(out)
    assert out.shape == (B, S, V)
    max_err = float(jnp.max(jnp.abs(out - ref)))
    assert jnp.allclose(out, ref, rtol=2e-2, atol=2e-2), \
        f"explicit-tile mismatch vs JAX reference (max abs err {max_err})"

    # 2) auto (VMEM-derived) tiles: exercises the default tile-selection path.
    out2 = bert_only_mlm_head(x, prepared)
    out2 = jax.block_until_ready(out2)
    max_err2 = float(jnp.max(jnp.abs(out2 - ref)))
    assert jnp.allclose(out2, ref, rtol=2e-2, atol=2e-2), \
        f"auto-tile mismatch vs JAX reference (max abs err {max_err2})"

    print("KERNEL_OK")
</pallas_src>

<mosaic_0001>
module attributes {stable_mosaic.version = 11 : i64} {
  func.func @_mlm_head_kernel(%arg0: i32, %arg1: i32, %arg2: memref<16x32xbf16, #tpu.memory_space<vmem>>, %arg3: memref<32x32xbf16, #tpu.memory_space<vmem>>, %arg4: memref<1x32xf32, #tpu.memory_space<vmem>>, %arg5: memref<1x32xf32, #tpu.memory_space<vmem>>, %arg6: memref<1x32xf32, #tpu.memory_space<vmem>>, %arg7: memref<32x128xbf16, #tpu.memory_space<vmem>>, %arg8: memref<1x128xf32, #tpu.memory_space<vmem>>, %arg9: memref<16x128xf32, #tpu.memory_space<vmem>>, %arg10: memref<16x32xbf16, #tpu.memory_space<vmem>>) attributes {dimension_semantics = [#tpu.dimension_semantics<parallel>, #tpu.dimension_semantics<arbitrary>], iteration_bounds = array<i64: 2, 2>, scalar_prefetch = 0 : i64, scratch_operands = 1 : i64, tpu.core_type = #tpu.core_type<tc>, window_params = [{transform_indices = @transform_0, window_bounds = array<i64: 16, 32>}, {pipeline_mode = #tpu.pipeline_mode<synchronous>, transform_indices = @transform_1, window_bounds = array<i64: 32, 32>}, {pipeline_mode = #tpu.pipeline_mode<synchronous>, transform_indices = @transform_2, window_bounds = array<i64: 1, 32>}, {pipeline_mode = #tpu.pipeline_mode<synchronous>, transform_indices = @transform_3, window_bounds = array<i64: 1, 32>}, {pipeline_mode = #tpu.pipeline_mode<synchronous>, transform_indices = @transform_4, window_bounds = array<i64: 1, 32>}, {transform_indices = @transform_5, window_bounds = array<i64: 32, 128>}, {transform_indices = @transform_6, window_bounds = array<i64: 1, 128>}, {transform_indices = @transform_7, window_bounds = array<i64: 16, 128>}]} {
    %c0_i32 = arith.constant 0 : i32
    %0 = arith.cmpi eq, %arg1, %c0_i32 : i32
    %1 = arith.extui %0 : i1 to i32
    %c0_i32_0 = arith.constant 0 : i32
    %2 = arith.cmpi ne, %1, %c0_i32_0 : i32
    scf.if %2 {
      %c0_8 = arith.constant 0 : index
      %c0_9 = arith.constant 0 : index
      %10 = vector.load %arg2[%c0_8, %c0_9] : memref<16x32xbf16, #tpu.memory_space<vmem>>, vector<16x32xbf16>
      %c0_10 = arith.constant 0 : index
      %c0_11 = arith.constant 0 : index
      %11 = vector.load %arg3[%c0_10, %c0_11] : memref<32x32xbf16, #tpu.memory_space<vmem>>, vector<32x32xbf16>
      %cst_12 = arith.constant dense<0.000000e+00> : vector<16x32xf32>
      %12 = tpu.matmul %10, %11, %cst_12 {dimension_numbers = #tpu.dot_dimension_numbers<[1], [0], [0], [1], [0, 0, 1, 1], [], []>} : vector<16x32xbf16>, vector<32x32xbf16>, vector<16x32xf32> -> vector<16x32xf32>
      %c0_13 = arith.constant 0 : index
      %c0_14 = arith.constant 0 : index
      %13 = vector.load %arg4[%c0_13, %c0_14] : memref<1x32xf32, #tpu.memory_space<vmem>>, vector<1x32xf32>
      %14 = vector.broadcast %13 : vector<1x32xf32> to vector<16x32xf32>
      %15 = arith.addf %12, %14 : vector<16x32xf32>
      %cst_15 = arith.constant 5.000000e-01 : f32
      %16 = vector.broadcast %cst_15 : f32 to vector<16x32xf32>
      %17 = arith.mulf %16, %15 : vector<16x32xf32>
      %cst_16 = arith.constant 4.471500e-02 : f32
      %18 = vector.broadcast %cst_16 : f32 to vector<16x32xf32>
      %19 = arith.mulf %18, %15 : vector<16x32xf32>
      %20 = arith.mulf %19, %15 : vector<16x32xf32>
      %21 = arith.mulf %20, %15 : vector<16x32xf32>
      %22 = arith.addf %15, %21 : vector<16x32xf32>
      %cst_17 = arith.constant 0.797884583 : f32
      %23 = vector.broadcast %cst_17 : f32 to vector<16x32xf32>
      %24 = arith.mulf %23, %22 : vector<16x32xf32>
      %25 = math.tanh %24 : vector<16x32xf32>
      %cst_18 = arith.constant 1.000000e+00 : f32
      %26 = vector.broadcast %cst_18 : f32 to vector<16x32xf32>
      %27 = arith.addf %26, %25 : vector<16x32xf32>
      %28 = arith.mulf %17, %27 : vector<16x32xf32>
      %cst_19 = arith.constant dense<0.000000e+00> : vector<16xf32>
      %29 = vector.multi_reduction <add>, %28, %cst_19 [1] : vector<16x32xf32> to vector<16xf32>
      %30 = vector.shape_cast %29 : vector<16xf32> to vector<16x1xf32>
      %cst_20 = arith.constant 3.200000e+01 : f32
      %31 = vector.broadcast %cst_20 : f32 to vector<16x1xf32>
      %32 = arith.divf %30, %31 : vector<16x1xf32>
      %33 = arith.mulf %28, %28 : vector<16x32xf32>
      %cst_21 = arith.constant dense<0.000000e+00> : vector<16xf32>
      %34 = vector.multi_reduction <add>, %33, %cst_21 [1] : vector<16x32xf32> to vector<16xf32>
      %35 = vector.shape_cast %34 : vector<16xf32> to vector<16x1xf32>
      %cst_22 = arith.constant 3.200000e+01 : f32
      %36 = vector.broadcast %cst_22 : f32 to vector<16x1xf32>
      %37 = arith.divf %35, %36 : vector<16x1xf32>
      %38 = arith.mulf %32, %32 : vector<16x1xf32>
      %39 = arith.subf %37, %38 : vector<16x1xf32>
      %40 = vector.broadcast %32 : vector<16x1xf32> to vector<16x32xf32>
      %41 = arith.subf %28, %40 : vector<16x32xf32>
      %cst_23 = arith.constant 9.99999996E-13 : f32
      %42 = vector.broadcast %cst_23 : f32 to vector<16x1xf32>
      %43 = arith.addf %39, %42 : vector<16x1xf32>
      %44 = math.rsqrt %43 : vector<16x1xf32>
      %45 = vector.broadcast %44 : vector<16x1xf32> to vector<16x32xf32>
      %46 = arith.mulf %41, %45 : vector<16x32xf32>
      %c0_24 = arith.constant 0 : index
      %c0_25 = arith.constant 0 : index
      %47 = vector.load %arg5[%c0_24, %c0_25] : memref<1x32xf32, #tpu.memory_space<vmem>>, vector<1x32xf32>
      %48 = vector.broadcast %47 : vector<1x32xf32> to vector<16x32xf32>
      %49 = arith.mulf %46, %48 : vector<16x32xf32>
      %c0_26 = arith.constant 0 : index
      %c0_27 = arith.constant 0 : index
      %50 = vector.load %arg6[%c0_26, %c0_27] : memref<1x32xf32, #tpu.memory_space<vmem>>, vector<1x32xf32>
      %51 = vector.broadcast %50 : vector<1x32xf32> to vector<16x32xf32>
      %52 = arith.addf %49, %51 : vector<16x32xf32>
      %53 = arith.truncf %52 : vector<16x32xf32> to vector<16x32xbf16>
      %c0_28 = arith.constant 0 : index
      %c0_29 = arith.constant 0 : index
      %54 = vector.load %arg10[%c0_28, %c0_29] : memref<16x32xbf16, #tpu.memory_space<vmem>>, vector<16x32xbf16>
      tpu.vector_store %arg10[%c0_28, %c0_29], %53 {strides = array<i32>} : memref<16x32xbf16, #tpu.memory_space<vmem>>, vector<16x32xbf16>,
    } else {
    }
    %c0 = arith.constant 0 : index
    %c0_1 = arith.constant 0 : index
    %3 = vector.load %arg10[%c0, %c0_1] : memref<16x32xbf16, #tpu.memory_space<vmem>>, vector<16x32xbf16>
    %c0_2 = arith.constant 0 : index
    %c0_3 = arith.constant 0 : index
    %4 = vector.load %arg7[%c0_2, %c0_3] : memref<32x128xbf16, #tpu.memory_space<vmem>>, vector<32x128xbf16>
    %cst = arith.constant dense<0.000000e+00> : vector<16x128xf32>
    %5 = tpu.matmul %3, %4, %cst {dimension_numbers = #tpu.dot_dimension_numbers<[1], [0], [0], [1], [0, 0, 1, 1], [], []>} : vector<16x32xbf16>, vector<32x128xbf16>, vector<16x128xf32> -> vector<16x128xf32>
    %c0_4 = arith.constant 0 : index
    %c0_5 = arith.constant 0 : index
    %6 = vector.load %arg8[%c0_4, %c0_5] : memref<1x128xf32, #tpu.memory_space<vmem>>, vector<1x128xf32>
    %7 = vector.broadcast %6 : vector<1x128xf32> to vector<16x128xf32>
    %8 = arith.addf %5, %7 : vector<16x128xf32>
    %c0_6 = arith.constant 0 : index
    %c0_7 = arith.constant 0 : index
    %9 = vector.load %arg9[%c0_6, %c0_7] : memref<16x128xf32, #tpu.memory_space<vmem>>, vector<16x128xf32>
    tpu.vector_store %arg9[%c0_6, %c0_7], %8 {strides = array<i32>} : memref<16x128xf32, #tpu.memory_space<vmem>>, vector<16x128xf32>,
    return
  }
  func.func @transform_0(%arg0: i32, %arg1: i32) -> (i32, i32) {
    %c0_i32 = arith.constant 0 : i32
    %c0_i32_0 = arith.constant 0 : i32
    return %arg0, %c0_i32 : i32, i32
  }
  func.func @transform_1(%arg0: i32, %arg1: i32) -> (i32, i32) {
    %c0_i32 = arith.constant 0 : i32
    %c0_i32_0 = arith.constant 0 : i32
    %c0_i32_1 = arith.constant 0 : i32
    return %c0_i32, %c0_i32_0 : i32, i32
  }
  func.func @transform_2(%arg0: i32, %arg1: i32) -> (i32, i32) {
    %c0_i32 = arith.constant 0 : i32
    %c0_i32_0 = arith.constant 0 : i32
    %c0_i32_1 = arith.constant 0 : i32
    return %c0_i32, %c0_i32_0 : i32, i32
  }
  func.func @transform_3(%arg0: i32, %arg1: i32) -> (i32, i32) {
    %c0_i32 = arith.constant 0 : i32
    %c0_i32_0 = arith.constant 0 : i32
    %c0_i32_1 = arith.constant 0 : i32
    return %c0_i32, %c0_i32_0 : i32, i32
  }
  func.func @transform_4(%arg0: i32, %arg1: i32) -> (i32, i32) {
    %c0_i32 = arith.constant 0 : i32
    %c0_i32_0 = arith.constant 0 : i32
    %c0_i32_1 = arith.constant 0 : i32
    return %c0_i32, %c0_i32_0 : i32, i32
  }
  func.func @transform_5(%arg0: i32, %arg1: i32) -> (i32, i32) {
    %c0_i32 = arith.constant 0 : i32
    %c0_i32_0 = arith.constant 0 : i32
    return %c0_i32, %arg1 : i32, i32
  }
  func.func @transform_6(%arg0: i32, %arg1: i32) -> (i32, i32) {
    %c0_i32 = arith.constant 0 : i32
    %c0_i32_0 = arith.constant 0 : i32
    return %c0_i32, %arg1 : i32, i32
  }
  func.func @transform_7(%arg0: i32, %arg1: i32) -> (i32, i32) {
    %c0_i32 = arith.constant 0 : i32
    return %arg0, %arg1 : i32, i32
  }
}

module attributes {stable_mosaic.version = 11 : i64} {
  func.func @_mlm_head_kernel(%arg0: i32, %arg1: i32, %arg2: memref<16x32xbf16, #tpu.memory_space<vmem>>, %arg3: memref<32x32xbf16, #tpu.memory_space<vmem>>, %arg4: memref<1x32xf32, #tpu.memory_space<vmem>>, %arg5: memref<1x32xf32, #tpu.memory_space<vmem>>, %arg6: memref<1x32xf32, #tpu.memory_space<vmem>>, %arg7: memref<32x128xbf16, #tpu.memory_space<vmem>>, %arg8: memref<1x128xf32, #tpu.memory_space<vmem>>, %arg9: memref<16x128xf32, #tpu.memory_space<vmem>>, %arg10: memref<16x32xbf16, #tpu.memory_space<vmem>>) attributes {dimension_semantics = [#tpu.dimension_semantics<parallel>, #tpu.dimension_semantics<arbitrary>], iteration_bounds = array<i64: 2, 2>, scalar_prefetch = 0 : i64, scratch_operands = 1 : i64, tpu.core_type = #tpu.core_type<tc>, window_params = [{transform_indices = @transform_0, window_bounds = array<i64: 16, 32>}, {pipeline_mode = #tpu.pipeline_mode<synchronous>, transform_indices = @transform_1, window_bounds = array<i64: 32, 32>}, {pipeline_mode = #tpu.pipeline_mode<synchronous>, transform_indices = @transform_2, window_bounds = array<i64: 1, 32>}, {pipeline_mode = #tpu.pipeline_mode<synchronous>, transform_indices = @transform_3, window_bounds = array<i64: 1, 32>}, {pipeline_mode = #tpu.pipeline_mode<synchronous>, transform_indices = @transform_4, window_bounds = array<i64: 1, 32>}, {transform_indices = @transform_5, window_bounds = array<i64: 32, 128>}, {transform_indices = @transform_6, window_bounds = array<i64: 1, 128>}, {transform_indices = @transform_7, window_bounds = array<i64: 16, 128>}]} {
    %c0_i32 = arith.constant 0 : i32
    %0 = arith.cmpi eq, %arg1, %c0_i32 : i32
    %1 = arith.extui %0 : i1 to i32
    %c0_i32_0 = arith.constant 0 : i32
    %2 = arith.cmpi ne, %1, %c0_i32_0 : i32
    scf.if %2 {
      %c0_8 = arith.constant 0 : index
      %c0_9 = arith.constant 0 : index
      %10 = vector.load %arg2[%c0_8, %c0_9] : memref<16x32xbf16, #tpu.memory_space<vmem>>, vector<16x32xbf16>
      %c0_10 = arith.constant 0 : index
      %c0_11 = arith.constant 0 : index
      %11 = vector.load %arg3[%c0_10, %c0_11] : memref<32x32xbf16, #tpu.memory_space<vmem>>, vector<32x32xbf16>
      %cst_12 = arith.constant dense<0.000000e+00> : vector<16x32xf32>
      %12 = tpu.matmul %10, %11, %cst_12 {dimension_numbers = #tpu.dot_dimension_numbers<[1], [0], [0], [1], [0, 0, 1, 1], [], []>} : vector<16x32xbf16>, vector<32x32xbf16>, vector<16x32xf32> -> vector<16x32xf32>
      %c0_13 = arith.constant 0 : index
      %c0_14 = arith.constant 0 : index
      %13 = vector.load %arg4[%c0_13, %c0_14] : memref<1x32xf32, #tpu.memory_space<vmem>>, vector<1x32xf32>
      %14 = vector.broadcast %13 : vector<1x32xf32> to vector<16x32xf32>
      %15 = arith.addf %12, %14 : vector<16x32xf32>
      %cst_15 = arith.constant 5.000000e-01 : f32
      %16 = vector.broadcast %cst_15 : f32 to vector<16x32xf32>
      %17 = arith.mulf %16, %15 : vector<16x32xf32>
      %cst_16 = arith.constant 4.471500e-02 : f32
      %18 = vector.broadcast %cst_16 : f32 to vector<16x32xf32>
      %19 = arith.mulf %18, %15 : vector<16x32xf32>
      %20 = arith.mulf %19, %15 : vector<16x32xf32>
      %21 = arith.mulf %20, %15 : vector<16x32xf32>
      %22 = arith.addf %15, %21 : vector<16x32xf32>
      %cst_17 = arith.constant 0.797884583 : f32
      %23 = vector.broadcast %cst_17 : f32 to vector<16x32xf32>
      %24 = arith.mulf %23, %22 : vector<16x32xf32>
      %25 = math.tanh %24 : vector<16x32xf32>
      %cst_18 = arith.constant 1.000000e+00 : f32
      %26 = vector.broadcast %cst_18 : f32 to vector<16x32xf32>
      %27 = arith.addf %26, %25 : vector<16x32xf32>
      %28 = arith.mulf %17, %27 : vector<16x32xf32>
      %cst_19 = arith.constant dense<0.000000e+00> : vector<16xf32>
      %29 = vector.multi_reduction <add>, %28, %cst_19 [1] : vector<16x32xf32> to vector<16xf32>
      %30 = vector.shape_cast %29 : vector<16xf32> to vector<16x1xf32>
      %cst_20 = arith.constant 3.200000e+01 : f32
      %31 = vector.broadcast %cst_20 : f32 to vector<16x1xf32>
      %32 = arith.divf %30, %31 : vector<16x1xf32>
      %33 = arith.mulf %28, %28 : vector<16x32xf32>
      %cst_21 = arith.constant dense<0.000000e+00> : vector<16xf32>
      %34 = vector.multi_reduction <add>, %33, %cst_21 [1] : vector<16x32xf32> to vector<16xf32>
      %35 = vector.shape_cast %34 : vector<16xf32> to vector<16x1xf32>
      %cst_22 = arith.constant 3.200000e+01 : f32
      %36 = vector.broadcast %cst_22 : f32 to vector<16x1xf32>
      %37 = arith.divf %35, %36 : vector<16x1xf32>
      %38 = arith.mulf %32, %32 : vector<16x1xf32>
      %39 = arith.subf %37, %38 : vector<16x1xf32>
      %40 = vector.broadcast %32 : vector<16x1xf32> to vector<16x32xf32>
      %41 = arith.subf %28, %40 : vector<16x32xf32>
      %cst_23 = arith.constant 9.99999996E-13 : f32
      %42 = vector.broadcast %cst_23 : f32 to vector<16x1xf32>
      %43 = arith.addf %39, %42 : vector<16x1xf32>
      %44 = math.rsqrt %43 : vector<16x1xf32>
      %45 = vector.broadcast %44 : vector<16x1xf32> to vector<16x32xf32>
      %46 = arith.mulf %41, %45 : vector<16x32xf32>
      %c0_24 = arith.constant 0 : index
      %c0_25 = arith.constant 0 : index
      %47 = vector.load %arg5[%c0_24, %c0_25] : memref<1x32xf32, #tpu.memory_space<vmem>>, vector<1x32xf32>
      %48 = vector.broadcast %47 : vector<1x32xf32> to vector<16x32xf32>
      %49 = arith.mulf %46, %48 : vector<16x32xf32>
      %c0_26 = arith.constant 0 : index
      %c0_27 = arith.constant 0 : index
      %50 = vector.load %arg6[%c0_26, %c0_27] : memref<1x32xf32, #tpu.memory_space<vmem>>, vector<1x32xf32>
      %51 = vector.broadcast %50 : vector<1x32xf32> to vector<16x32xf32>
      %52 = arith.addf %49, %51 : vector<16x32xf32>
      %53 = arith.truncf %52 : vector<16x32xf32> to vector<16x32xbf16>
      %c0_28 = arith.constant 0 : index
      %c0_29 = arith.constant 0 : index
      %54 = vector.load %arg10[%c0_28, %c0_29] : memref<16x32xbf16, #tpu.memory_space<vmem>>, vector<16x32xbf16>
      tpu.vector_store %arg10[%c0_28, %c0_29], %53 {strides = array<i32>} : memref<16x32xbf16, #tpu.memory_space<vmem>>, vector<16x32xbf16>,
    } else {
    }
    %c0 = arith.constant 0 : index
    %c0_1 = arith.constant 0 : index
    %3 = vector.load %arg10[%c0, %c0_1] : memref<16x32xbf16, #tpu.memory_space<vmem>>, vector<16x32xbf16>
    %c0_2 = arith.constant 0 : index
    %c0_3 = arith.constant 0 : index
    %4 = vector.load %arg7[%c0_2, %c0_3] : memref<32x128xbf16, #tpu.memory_space<vmem>>, vector<32x128xbf16>
    %cst = arith.constant dense<0.000000e+00> : vector<16x128xf32>
    %5 = tpu.matmul %3, %4, %cst {dimension_numbers = #tpu.dot_dimension_numbers<[1], [0], [0], [1], [0, 0, 1, 1], [], []>} : vector<16x32xbf16>, vector<32x128xbf16>, vector<16x128xf32> -> vector<16x128xf32>
    %c0_4 = arith.constant 0 : index
    %c0_5 = arith.constant 0 : index
    %6 = vector.load %arg8[%c0_4, %c0_5] : memref<1x128xf32, #tpu.memory_space<vmem>>, vector<1x128xf32>
    %7 = vector.broadcast %6 : vector<1x128xf32> to vector<16x128xf32>
    %8 = arith.addf %5, %7 : vector<16x128xf32>
    %c0_6 = arith.constant 0 : index
    %c0_7 = arith.constant 0 : index
    %9 = vector.load %arg9[%c0_6, %c0_7] : memref<16x128xf32, #tpu.memory_space<vmem>>, vector<16x128xf32>
    tpu.vector_store %arg9[%c0_6, %c0_7], %8 {strides = array<i32>} : memref<16x128xf32, #tpu.memory_space<vmem>>, vector<16x128xf32>,
    return
  }
  func.func @transform_0(%arg0: i32, %arg1: i32) -> (i32, i32) {
    %c0_i32 = arith.constant 0 : i32
    %c0_i32_0 = arith.constant 0 : i32
    return %arg0, %c0_i32 : i32, i32
  }
  func.func @transform_1(%arg0: i32, %arg1: i32) -> (i32, i32) {
    %c0_i32 = arith.constant 0 : i32
    %c0_i32_0 = arith.constant 0 : i32
    %c0_i32_1 = arith.constant 0 : i32
    return %c0_i32, %c0_i32_0 : i32, i32
  }
  func.func @transform_2(%arg0: i32, %arg1: i32) -> (i32, i32) {
    %c0_i32 = arith.constant 0 : i32
    %c0_i32_0 = arith.constant 0 : i32
    %c0_i32_1 = arith.constant 0 : i32
    return %c0_i32, %c0_i32_0 : i32, i32
  }
  func.func @transform_3(%arg0: i32, %arg1: i32) -> (i32, i32) {
    %c0_i32 = arith.constant 0 : i32
    %c0_i32_0 = arith.constant 0 : i32
    %c0_i32_1 = arith.constant 0 : i32
    return %c0_i32, %c0_i32_0 : i32, i32
  }
  func.func @transform_4(%arg0: i32, %arg1: i32) -> (i32, i32) {
    %c0_i32 = arith.constant 0 : i32
    %c0_i32_0 = arith.constant 0 : i32
    %c0_i32_1 = arith.constant 0 : i32
    return %c0_i32, %c0_i32_0 : i32, i32
  }
  func.func @transform_5(%arg0: i32, %arg1: i32) -> (i32, i32) {
    %c0_i32 = arith.constant 0 : i32
    %c0_i32_0 = arith.constant 0 : i32
    return %c0_i32, %arg1 : i32, i32
  }
  func.func @transform_6(%arg0: i32, %arg1: i32) -> (i32, i32) {
    %c0_i32 = arith.constant 0 : i32
    %c0_i32_0 = arith.constant 0 : i32
    return %c0_i32, %arg1 : i32, i32
  }
  func.func @transform_7(%arg0: i32, %arg1: i32) -> (i32, i32) {
    %c0_i32 = arith.constant 0 : i32
    return %arg0, %arg1 : i32, i32
  }
}

</mosaic_0001>

<bundles_post_ra>
// kernel: tpu_custom_call.1
= control target key start
LH: loop header
LB: loop body
LE: loop exit
PB: predicated region body
PF: predicated region fallthrough
CT: control target
= control target key end

     0   :  { %s1692_s0 = inlined_call_operand.hbm [shape: bf16[32,32], index: 0, kind: input, shape index: {}]   ;;  %s1693_s1 = inlined_call_operand.hbm [shape: bf16[32,32], index: 1, kind: input, shape index: {}]   ;;  %s1694_s2 = inlined_call_operand.vmem [shape: f32[1,32], index: 2, kind: input, shape index: {}]   ;;  %s1695_s3 = inlined_call_operand.vmem [shape: f32[1,32], index: 3, kind: input, shape index: {}]   ;;  %s1696_s4 = inlined_call_operand.vmem [shape: f32[1,32], index: 4, kind: input, shape index: {}]   ;;  %s1697_s5 = inlined_call_operand.hbm [shape: bf16[32,256], index: 5, kind: input, shape index: {}]   ;;  %s1698_s6 = inlined_call_operand.vmem [shape: f32[1,256], index: 6, kind: input, shape index: {}]   ;;  %s1699_s7 = inlined_call_operand.hbm [shape: f32[32,256], index: 7, kind: output, shape index: {}]  }
   0x1   :  { %1720 = sst [smem:[#allocation25_spill]] %s1692_s0 }
   0x2   :  { %1721 = sst [smem:[#allocation26_spill]] %s1694_s2 }
   0x3   :  { %1722 = sst [smem:[#allocation27_spill]] %s1695_s3 }
   0x4   :  { %1723 = sst [smem:[#allocation28_spill]] %s1696_s4 }
   0x5   :  { %1724 = sst [smem:[#allocation29_spill]] %s1698_s6 }
   0x6   :  { %1725 = sst [smem:[#allocation30_spill]] %s1699_s7 }
   0x7   :  { %12 = vsyncpa [#allocation4], 0 }
   0x8   :  { %14 = vsyncpa [#allocation4 + $0x1], 0 }
   0x9   :  { %15 = vsyncpa [#allocation7], 0 }
   0xa   :  { %16 = vsyncpa [#allocation5], 0 }
   0xb   :  { %18 = vsyncpa [#allocation5 + $0x1], 0  ;;  %s1259_s24 = smov 0   ;;  %s1261_s25 = smov 0  }
   0xc   :  { %s1263_s26 = smov 0   ;;  %s1265_s27 = smov 0  }
   0xd   :  { %s1267_s28 = smov 0   ;;  %s1269_s29 = smov 0  }
   0xe   :  { %s1271_s30 = smov 0   ;;  %s1273_s8 = smov 0  }
   0xf   :  { %s1275_s9 = smov 0   ;;  %s1277_s10 = smov 0  }
  0x10   :  { %s1279_s11 = smov 0   ;;  %s1281_s12 = smov 0  }
  0x11   :  { %s1283_s13 = smov 0   ;;  %s1285_s14 = smov 0  }
  0x12 LB: > { %1726 = sst [smem:[#allocation14_spill]] %s1171_s29  ;;  %s33_s15 = sadd.s32 1, %s1195_s12  ;;  %s1203_s14 = sphi %s1285_s14, %s24_s14   ;;  %s1199_s13 = sphi %s1283_s13, %s1789_s13   ;;  %s1195_s12 = sphi %s1281_s12, %s1788_s12   ;;  %s1191_s11 = sphi %s1279_s11, %s1787_s11   ;;  %s1187_s10 = sphi %s1277_s10, %s1775_s10   ;;  %s1183_s9 = sphi %s1275_s9, %s1774_s9   ;;  %s1179_s8 = sphi %s1273_s8, %s1786_s8   ;;  %s1175_s30 = sphi %s1271_s30, %s1785_s30   ;;  %s1171_s29 = sphi %s1269_s29, %s1772_s29   ;;  %s1167_s28 = sphi %s1267_s28, %s1784_s28   ;;  %s1163_s27 = sphi %s1265_s27, %s1783_s27   ;;  %s1159_s26 = sphi %s1263_s26, %s1782_s26   ;;  %s1155_s25 = sphi %s1261_s25, %s1781_s25   ;;  %s1151_s24 = sphi %s1259_s24, %s1780_s24  }
  0x13   : > { %1727 = sst [smem:[#allocation15_spill]] %s1183_s9  ;;  %s36_s16 = sadd.s32 1, %s1199_s13 }
  0x14   : > { %1728 = sst [smem:[#allocation16_spill]] %s1187_s10  ;;  %p34_p0 = scmp.ge.s32.totalorder %s33_s15, 2 }
  0x15   : > { %1729 = sst [smem:[#allocation17_spill]] %s1191_s11  ;;  %s43_s17 = sadd.s32 1, %s1183_s9 }
  0x16   : > { %1730 = sst [smem:[#allocation18_spill]] %s1195_s12  ;;  %p50_p1 = scmp.ne.s32.totalorder %s1183_s9, %s1179_s8 }
  0x17   : > { %1731 = sst [smem:[#allocation19_spill]] %s1199_s13  ;;  %p1705_p2 = scmp.eq.s32.totalorder %s1203_s14, 0 }
  0x18   : > { %s1791_s15 = smov (%p34_p0, %s33_s15), 0  ;;  %s1793_s16 = smov (!%p34_p0, %s36_s16), %s1199_s13 }
  0x19   : > { %1732 = sst [smem:[#allocation20_spill]] %s1791_s15  ;;  %p1340_p3 = por %p1705_p2, %p50_p1 }
  0x1a   : > { %s1346_s19 = ssub.s32 %s1195_s12, %s1791_s15  ;;  %p38_p4 = scmp.ge.s32.totalorder %s1793_s16, 2 }
  0x1b   : > { %p151_p5 = scmp.eq.s32.totalorder %s1346_s19, 0  ;;  %s207_s20 = sadd.s32 1, %s1159_s26 }
  0x1c   : > { %s1795_s16 = smov (%p38_p4, %s1793_s16), 0  ;;  %p1704_p6 = scmp.lt.s32.totalorder %s1203_s14, 4 }
  0x1d   : > { %1734 = sst [smem:[#allocation21_spill]] %s1795_s16  ;;  %s40_s21 = ssub.s32 %s1199_s13, %s1795_s16 }
  0x1e   : > { %p41_p7 = scmp.eq.s32.totalorder %s40_s21, 0  ;;  %s204_s22 = sor.u32 %s1346_s19, %s40_s21 }
  0x1f   : > { %p205_p8 = scmp.eq.s32.totalorder %s204_s22, 0  ;;  %s266_s23 = sand.u32 1, %s1203_s14  }
  0x20   : > { %s1358_s7 = scalar_select %p41_p7, %s1183_s9, %s43_s17  }
  0x21   : > { %s1361_s15 = scalar_select %p205_p8, %s1159_s26, %s207_s20  }
  0x22   : > { %1735 = sst [smem:[#allocation22_spill]] %s1358_s7  ;;  %s268_s11 = sand.u32 1, %s1183_s9  }
  0x23   : > { %1736 = sst [smem:[#allocation23_spill]] %s1361_s15  ;;  %s744_s4 = sshll.u32 %s268_s11, 3 }
  0x24   : > { %s772_s3 = sshll.u32 %s1199_s13, 7  ;;  %s1737_s0 = sld [smem:[#allocation25_spill]] }
  0x25   : > { %s270_s16 = scalar_lea.vmem [#allocation3], %s744_s4  ;;  %p1374_p9 = pnand %p1704_p6, %p1340_p3 }
  0x26   : > { %s277_s21 = sshll.u32 %s270_s16, 4  ;;  %s1380_s11 = scalar_lea.sflag [#allocation4], %s266_s23  ;;  %s1378_s21 = int_to_ptr.vmem [resolvable:$true] %s277_s21 }
  0x27   : > { %p963_p11 = pneg %p1374_p9 }
  0x2a   : > { %s1368_s10 = scalar_lea.hbm %s1737_s0, %s772_s3  ;;  %s966_s6 = scalar_lea.hbm %s1737_s0, 256 }
  0x2b   : > { %s961_s2 = scalar_lea.hbm %s1368_s10, 128  ;;  %p967_p0 = scmp.lt.u32.totalorder %s1368_s10, %s1737_s0 }
  0x2c   : > { %p962_p10 = scmp.ne.s32.totalorder %s1368_s10, %s961_s2  ;;  %p968_p1 = scmp.lt.u32.totalorder %s966_s6, %s961_s2 }
  0x2d   : > { %p970_p4 = scmp.lt.u32.totalorder %s961_s2, %s1368_s10 }
  0x2e   : > { %p964_p12 = pnand %p963_p11, %p962_p10  ;;  %p969_p3 = por %p968_p1, %p967_p0 }
  0x30   : > { %p965_p13 = pneg %p964_p12  ;;  %p971_p7 = por %p970_p4, %p969_p3 }
  0x32   : > { %p972_p8 = pnand %p971_p7, %p965_p13 }
  0x34   : > { %975 = shalt.err (!%p972_p8)
}
  0x35   : > { %s976_s20 = scalar_lea.vmem %s1378_s21, 128  ;;  %s1205_s22 = smov [#allocation3]  }
  0x36   : > { %p977_p10 = scmp.ne.s32.totalorder %s1378_s21, %s976_s20  ;;  %s981_s23 = sshll.u32 %s1205_s22, 4  ;;  %s982_s23 = int_to_ptr.vmem [resolvable:$false] %s981_s23 }
  0x37   : > { %s983_s3 = scalar_lea.vmem %s982_s23, 256  ;;  %p984_p2 = scmp.lt.s32.totalorder %s1378_s21, %s982_s23 }
  0x38   : > { %p979_p12 = pnand %p977_p10, %p963_p11  ;;  %p985_p0 = scmp.lt.s32.totalorder %s983_s3, %s976_s20 }
  0x3a   : > { %p980_p6 = pneg %p979_p12  ;;  %p986_p1 = por %p985_p0, %p984_p2 }
  0x3c   : > { %p987_p3 = pnand %p986_p1, %p980_p6 }
  0x3e   : > { %990 = shalt.err (!%p987_p3)
}
  0x3f   : > { %s1706_s2 = smov 64   ;;  %s1708_s4 = smov 4  }
  0x40   : > { %813 = dma.hbm_to_vmem [thread:$0]  (!%p1374_p9), %s1368_s10, 128, %s1378_s21, %s1380_s11, %s1706_s2, %s1706_s2, %s1708_s4  }
  0x41   : > { %s1412_s6 = sadd.s32 4294967295, %s1203_s14   ;;  %s740_s16 = sadd.s32 4294967294, %s1203_s14  }
  0x42   : > { %p56_p2 = scmp.ne.s32.totalorder %s1179_s8, %s1175_s30  ;;  %p1714_p6 = scmp.eq.s32.totalorder %s1412_s6, 0 }
  0x43   : > { %s153_s18 = sadd.s32 1, %s1171_s29  ;;  %p160_p11 = scmp.ne.s32.totalorder %s1171_s29, %s1167_s28 }
  0x44   : > { %p1423_p13 = por %p1714_p6, %p56_p2  ;;  %p166_p4 = scmp.ne.s32.totalorder %s1167_s28, %s1163_s27 }
  0x45   : > { %s1432_s10 = scalar_select %p151_p5, %s1171_s29, %s153_s18  }
  0x46   : > { %s1739_s17 = scalar_select %p1423_p13, 1, 0 }
  0x47   : > { %1740 = sst [smem:[#allocation24_spill]] %s1432_s10  ;;  %p1741_p9 = scmp.eq.s32.totalorder %s1203_s14, 0 }
  0x48   : > { %p1442_p8 = por %p166_p4, %p1714_p6  ;;  %p217_p10 = scmp.ne.s32.totalorder %s1159_s26, %s1155_s25 }
  0x49   : > { %p1436_p7 = por %p160_p11, %p1741_p9  ;;  %p218_p12 = scmp.eq.s32.totalorder %s1412_s6, 3 }
  0x4a   : > { %s1743_s30 = scalar_select %p1442_p8, 1, 0 }
  0x4b   : > { %p223_p0 = scmp.ne.s32.totalorder %s1155_s25, %s1151_s24  ;;  %p224_p1 = scmp.eq.s32.totalorder %s740_s16, 3 }
  0x4c   : > { %p1451_p5 = por %p218_p12, %p217_p10  ;;  %p741_p3 = scmp.ge.s32.totalorder %s1203_s14, 1 }
  0x4d   : > { %p1456_p2 = por %p224_p1, %p223_p0  ;;  %p231_p11 = scmp.lt.s32.totalorder %s1203_s14, 5 }
  0x4e   : > { %s1744_s27 = scalar_select %p1451_p5, 1, 0 }
  0x4f   : > { %s1745_s19 = scalar_select %p1456_p2, 1, 0 }
  0x50   : > { %p1461_p4 = pnand %p741_p3, %p231_p11  ;;  %s1208_s22 = smov [#allocation6]  }
  0x51   : > { %s243_s23 = sshll.u32 %s1208_s22, 4  ;;  %p1747_p9 = scmp.lt.s32.totalorder %s1203_s14, 4  ;;  %s1465_s23 = int_to_ptr.vmem [resolvable:$true] %s243_s23 }
  0x52   : > { %s1746_s20 = scalar_select %p1461_p4, 1, 0 }
  0x53   : > { %p1471_p10 = pnand %p1747_p9, %p1436_p7  ;;  %p806_p12 = pneg %p1461_p4 }
  0x54   : > { %s289_s16 = sand.u32 1, %s1171_s29   ;;  %s748_s4 = sshll.u32 %s1195_s12, 6 }
  0x55   : > { %s1748_s3 = scalar_select %p1471_p10, 1, 0 }
  0x56   : > { %s747_s18 = sshll.u32 %s289_s16, 4  ;;  %p1480_p0 = pnand %p806_p12, %p1714_p6 }
  0x57   : > { %s291_s22 = scalar_lea.vmem [#allocation8], %s747_s18  ;;  %s1488_s7 = scalar_lea.hbm %s1697_s5, %s748_s4 }
  0x58   : > { %s297_s0 = sshll.u32 %s291_s22, 4  ;;  %s991_s15 = scalar_lea.hbm %s1693_s1, 256  ;;  %s1514_s0 = int_to_ptr.vmem [resolvable:$true] %s297_s0 }
  0x59   : > { %p992_p7 = scmp.ne.s32.totalorder %s1693_s1, %s991_s15  ;;  %p993_p1 = pneg %p1480_p0 }
  0x5a   : > { %p998_p9 = scmp.lt.u32.totalorder %s991_s15, %s1693_s1 }
  0x5b   : > { %p994_p3 = pnand %p993_p1, %p992_p7 }
  0x5d   : > { %p995_p11 = pneg %p994_p3 }
  0x5f   : > { %p1000_p12 = pnand %p998_p9, %p995_p11 }
  0x61   : > { %1003 = shalt.err (!%p1000_p12)
}
  0x62   : > { %s1004_s13 = scalar_lea.vmem %s1465_s23, 256  ;;  %p1012_p8 = scmp.lt.s32.totalorder %s1465_s23, %s1465_s23 }
  0x63   : > { %p1005_p6 = scmp.ne.s32.totalorder %s1465_s23, %s1004_s13  ;;  %p1013_p13 = scmp.lt.s32.totalorder %s1004_s13, %s1004_s13 }
  0x65   : > { %p1007_p2 = pnand %p1005_p6, %p993_p1  ;;  %p1014_p4 = por %p1013_p13, %p1012_p8 }
  0x67   : > { %p1008_p5 = pneg %p1007_p2 }
  0x69   : > { %p1015_p10 = pnand %p1014_p4, %p1008_p5 }
  0x6b   : > { %1018 = shalt.err (!%p1015_p10)
}
  0x6c   : > { %s1750_s29 = smov 4   ;;  %s1751_s9 = smov 64  }
  0x6d   : > { %809 = dma.hbm_to_vmem [thread:$0]  (!%p1480_p0), %s1693_s1, 256, %s1465_s23, [#allocation7], %s1751_s9, %s1751_s9, %s1750_s29  }
  0x6e   : > { %s1019_s4 = scalar_lea.hbm %s1488_s7, 256  ;;  %p1752_p13 = scmp.ne.s32.totalorder %s1748_s3, 0 }
  0x6f   : > { %p1020_p6 = scmp.ne.s32.totalorder %s1488_s7, %s1019_s4  ;;  %s1024_s22 = scalar_lea.hbm %s1697_s5, 512 }
  0x70   : > { %p1021_p8 = pneg %p1752_p13  ;;  %p1025_p4 = scmp.lt.u32.totalorder %s1488_s7, %s1697_s5 }
  0x71   : > { %p1026_p10 = scmp.lt.u32.totalorder %s1024_s22, %s1019_s4  ;;  %p1028_p7 = scmp.lt.u32.totalorder %s1019_s4, %s1488_s7 }
  0x72   : > { %p1022_p5 = pnand %p1021_p8, %p1020_p6 }
  0x73   : > { %p1027_p0 = por %p1026_p10, %p1025_p4 }
  0x74   : > { %p1023_p2 = pneg %p1022_p5 }
  0x75   : > { %p1029_p1 = por %p1028_p7, %p1027_p0 }
  0x77   : > { %p1030_p3 = pnand %p1029_p1, %p1023_p2 }
  0x79   : > { %1033 = shalt.err (!%p1030_p3)
}
  0x7a   : > { %s1034_s23 = scalar_lea.vmem %s1514_s0, 256  ;;  %s1209_s18 = smov [#allocation8]  }
  0x7b   : > { %p1035_p11 = scmp.ne.s32.totalorder %s1514_s0, %s1034_s23  ;;  %s1039_s13 = sshll.u32 %s1209_s18, 4  ;;  %s1040_s13 = int_to_ptr.vmem [resolvable:$false] %s1039_s13 }
  0x7c   : > { %s1041_s12 = scalar_lea.vmem %s1040_s13, 512  ;;  %p1042_p6 = scmp.lt.s32.totalorder %s1514_s0, %s1040_s13 }
  0x7d   : > { %p1037_p9 = pnand %p1035_p11, %p1021_p8  ;;  %p1043_p5 = scmp.lt.s32.totalorder %s1041_s12, %s1034_s23 }
  0x7f   : > { %p1038_p12 = pneg %p1037_p9  ;;  %p1044_p4 = por %p1043_p5, %p1042_p6 }
  0x81   : > { %p1045_p10 = pnand %p1044_p4, %p1038_p12 }
  0x83   : > { %1048 = shalt.err (!%p1045_p10)
}
  0x84   : > { %s1210_s15 = smov 128   ;;  %p1753_p8 = scmp.ne.s32.totalorder %s1746_s20, 0 }
  0x85   : > { %816 = dma.hbm_to_vmem [thread:$0]  (!%p1752_p13), %s1488_s7, 256, %s1514_s0, %s1380_s11, %s1210_s15, %s1751_s9, %s1750_s29  }
  0x86   : > { %315 = sbr.rel (%p1753_p8) target bundleno = 821 (0x335), region = 48  ;;  %s317_s4 = sand.u32 (!%p1753_p8), 1, %s1412_s6  }
  0x87   : > { %s319_s2 = sand.u32 (!%p1753_p8), 1, %s1179_s8   ;;  %s318_s22 = scalar_lea.sflag (!%p1753_p8), [#allocation4], %s317_s4 }
  0x88   : > { %s750_s10 = sshll.u32 (!%p1753_p8), %s319_s2, 3  ;;  %p1754_p2 = scmp.ne.s32.totalorder (!%p1753_p8), %s1739_s17, 0 }
  0x89   : > { %s321_s21 = scalar_lea.vmem (!%p1753_p8), [#allocation3], %s750_s10 }
  0x8d   : > { %1134 = dma.done.wait (%p1754_p2), %s318_s22, 128  }
  0x8e   : > { %1136 = vsyncadd (%p1754_p2), %s318_s22, 4294967168  ;;  %p1755_p0 = scmp.eq.s32.totalorder %s1412_s6, 0 }
  0x90   : > { %1138 = dma.done.wait (%p1755_p0), [#allocation7], 256   ;;  %p1756_p13 = pmov %p1755_p0 }
  0x91   : > { %s332_s0 = sand.u32 1, %s1167_s28   ;;  %p1757_p7 = scmp.ne.s32.totalorder %s1743_s30, 0 }
  0x92   : > { %1140 = vsyncadd (%p1756_p13), [#allocation7], 4294967040  ;;  %s1557_s7 = sshll.u32 %s332_s0, 4 }
  0x93   : > { %s334_s11 = scalar_lea.vmem [#allocation8], %s1557_s7 }
  0x94   : > { %1142 = dma.done.wait (%p1757_p7), %s318_s22, 256  }
  0x95   : > { %1144 = vsyncadd (%p1757_p7), %s318_s22, 4294967040  ;;  %s1758_s17 = sld [smem:[#allocation16_spill]]  ;;  %s370_s20 = sand.u32 1, %s1155_s25  }
  0x96   : > { %s753_s6 = sshll.u32 %s370_s20, 4  ;;  %s1759_s16 = sld [smem:[#allocation29_spill]] }
  0x97   : > { %s1575_s18 = scalar_lea.vmem [#allocation9], %s753_s6 }
  0x9b   : > { %p374_p1 = scmp.lt.s32.totalorder %s1758_s17, 1  ;;  %p754_p3 = scmp.ne.s32.totalorder %s1758_s17, 0 }
  0x9c   : > { %v948_v0 = vld [vmem:[#allocation6] sm:$0xff] (!%p754_p3)   ;;  %v1211_v1 = vmov (!%p754_p3), 0.0   ;;  %v949_v2 = vld [vmem:[#allocation6 + $0x8] sm:$0xff] (!%p754_p3)   ;;  %vm1212_vm0 = vmmov (!%p754_p3), 0   ;;  %v950_v3 = vld [vmem:[%s321_s21] sm:$0xff] (!%p754_p3)   ;;  %vm413_vm1 = vcmask (!%p754_p3), 261120  }
  0x9d   : > { %s1569_s3 = scalar_select %p374_p1, %s1758_s17, 1 }
  0x9e   : > { %382 = sbr.rel (%p754_p3) target bundleno = 580 (0x244), region = 64  ;;  %780 = vmatprep.subr.bf16.mxu0 (!%p754_p3), %v1211_v1  ;;  %784 = vmatprep.mubr.msk.bf16.mxu0 (!%p754_p3), %vm1212_vm0, %v1211_v1  ;;  %s1760_s12 = sld [smem:[#allocation26_spill]] (!%p754_p3) }
  0x9f   : > { %s376_s23 = scalar_lea.vmem %s1759_s16, %s1569_s3  ;;  %781 = vmatpush3.bf16.msra.mxu0 (!%p754_p3), %v948_v0  ;;  %s1761_s2 = sld [smem:[#allocation27_spill]] (!%p754_p3) }
  0xa0   : > { %782 = vmatprep.subr.bf16.mxu0 (!%p754_p3), %v1211_v1  ;;  %s1762_s21 = sld [smem:[#allocation28_spill]] (!%p754_p3) }
  0xa3   : > { %783 = vmatpush3.bf16.msra.mxu0 (!%p754_p3), %v949_v2 }
  0xa4   : > { %v755_v4 = vld [vmem:[%s1760_s12] ss:$0 sm:$0xff] (!%p754_p3) }
  0xa5   : > { %v760_v52 = vld [vmem:[%s1761_s2] ss:$0 sm:$0xff] }
  0xa6   : > { %785 = vmatmul.mubr.msk.bf16.vlgmr.msra.gmra.mrb[0].mxu0 %vm413_vm1, %v950_v3  ;;  %v761_v57 = vld [vmem:[%s1762_s21] ss:$0 sm:$0xff] }
 0x179   : > { %v451_v5 = vpop.f32.mrb[0].mxu0 }
 0x17a   : > { %v452_v6 = vadd.f32 %v755_v4, %v451_v5  ;;  %v786_v7 = vpop.f32.mrb[1].mxu0 }
 0x17b   : > { %v454_v8 = vpop.f32.mrb[2].mxu0 }
 0x17c   : > { %v460_v9 = vmul.f32 0.044715, %v452_v6  ;;  %v455_v10 = vadd.f32 %v755_v4, %v454_v8  ;;  %v787_v11 = vpop.f32.mrb[3].mxu0  ;;  %v458_v22 = vmul.f32 0.5, %v452_v6 }
 0x17e   : > { %v462_v12 = vmul.f32 %v460_v9, %v452_v6  ;;  %v461_v13 = vmul.f32 0.044715, %v455_v10  ;;  %v459_v26 = vmul.f32 0.5, %v455_v10 }
 0x180   : > { %v463_v14 = vmul.f32 %v461_v13, %v455_v10  ;;  %v464_v15 = vmul.f32 %v462_v12, %v452_v6 }
 0x182   : > { %v466_v16 = vadd.f32 %v464_v15, %v452_v6  ;;  %v465_v17 = vmul.f32 %v463_v14, %v455_v10 }
 0x184   : > { %v468_v18 = vmul.f32 0.7978846, %v466_v16  ;;  %v467_v19 = vadd.f32 %v465_v17, %v455_v10 }
 0x186   : > { %951 = vtanh.f32 %v468_v18  ;;  %v469_v20 = vmul.f32 0.7978846, %v467_v19 }
 0x188   : > { %953 = vtanh.f32 %v469_v20 }
 0x190   : > { %v952_v21 = vpop.eup %951 }
 0x191   : > { %v472_v23 = vadd.f32 1.0, %v952_v21 }
 0x192   : > { %v954_v24 = vpop.eup %953 }
 0x193   : > { %v474_v25 = vmul.f32 %v472_v23, %v458_v22  ;;  %v473_v27 = vadd.f32 1.0, %v954_v24 }
 0x195   : > { %v476_v28 = vsel %vm413_vm1, %v474_v25, 0.0  ;;  %v485_v29 = vmul.f32 %v474_v25, %v474_v25  ;;  %v475_v30 = vmul.f32 %v473_v27, %v459_v26 }
 0x196   : > { %477 = vadd.xlane.f32.xlu0 %v476_v28 }
 0x197   : > { %v487_v31 = vsel %vm413_vm1, %v485_v29, 0.0  ;;  %v486_v32 = vmul.f32 %v475_v30, %v475_v30  ;;  %v479_v33 = vsel %vm413_vm1, %v475_v30, 0.0 }
 0x198   : > { %488 = vadd.xlane.f32.xlu1 %v487_v31 }
 0x199   : > { %v490_v34 = vsel %vm413_vm1, %v486_v32, 0.0 }
 0x19a   : > { %480 = vadd.xlane.f32.xlu0 %v479_v33 }
 0x19c   : > { %491 = vadd.xlane.f32.xlu1 %v490_v34 }
 0x223   : > { %v478_v35 = vpop.xlane.xlu0 %477 }
 0x224   : > { %v483_v36 = vmul.f32 0.03125, %v478_v35 }
 0x225   : > { %v489_v37 = vpop.xlane.xlu1 %488 }
 0x226   : > { %v495_v38 = vmul.f32 %v483_v36, %v483_v36  ;;  %v493_v39 = vmul.f32 0.03125, %v489_v37  ;;  %v499_v49 = vsub.f32 %v474_v25, %v483_v36 }
 0x227   : > { %v481_v40 = vpop.xlane.xlu0 %480 }
 0x228   : > { %v497_v41 = vsub.f32 %v493_v39, %v495_v38  ;;  %v484_v42 = vmul.f32 0.03125, %v481_v40 }
 0x229   : > { %v492_v43 = vpop.xlane.xlu1 %491 }
 0x22a   : > { %v501_v44 = vadd.f32 1e-12, %v497_v41  ;;  %v496_v45 = vmul.f32 %v484_v42, %v484_v42  ;;  %v494_v46 = vmul.f32 0.03125, %v492_v43  ;;  %v500_v53 = vsub.f32 %v475_v30, %v484_v42 }
 0x22c   : > { %955 = vrsqrt.f32 %v501_v44  ;;  %v498_v47 = vsub.f32 %v494_v46, %v496_v45 }
 0x22e   : > { %v502_v48 = vadd.f32 1e-12, %v498_v47 }
 0x230   : > { %957 = vrsqrt.f32 %v502_v48 }
 0x236   : > { %v956_v50 = vpop.eup %955 }
 0x237   : > { %v505_v51 = vmul.f32 %v956_v50, %v499_v49 }
 0x239   : > { %v514_v55 = vmul.f32 %v760_v52, %v505_v51 }
 0x23a   : > { %v958_v54 = vpop.eup %957 }
 0x23b   : > { %v506_v56 = vmul.f32 %v958_v54, %v500_v53  ;;  %v523_v59 = vadd.f32 %v761_v57, %v514_v55 }
 0x23d   : > { %v515_v58 = vmul.f32 %v760_v52, %v506_v56 }
 0x23f   : > { %v524_v60 = vadd.f32 %v761_v57, %v515_v58 }
 0x241   : > { %v525_v61 = vpack.c.bf16 %v524_v60, %v523_v59 }
 0x243   : > { %526 = vst.msk [vmem:[#allocation2] sm:$0xff] %vm413_vm1, %v525_v61 }
 0x244 PF: > { %s1763_s0 = sld [smem:[#allocation17_spill]]  ;;  %s1764_s17 = sld [smem:[#allocation16_spill]]  ;;  %v959_v62 = vld [vmem:[%s334_s11] sm:$0xff]   ;;  %v1213_v63 = vmov 0.0   ;;  %v960_v0 = vld [vmem:[%s334_s11 + $0x8] sm:$0xff]   ;;  %vm1214_vm2 = vmmov 0  }
 0x245   : > { %788 = vmatprep.subr.bf16.mxu0 %v1213_v63  ;;  %792 = vmatprep.mubr.msk.bf16.mxu0 %vm1214_vm2, %v1213_v63  ;;  %vm551_vm3 = vcmask 261120   ;;  %v762_v2 = vld [vmem:[%s376_s23] ss:$0 sm:$0xff]  ;;  %s614_s11 = sshll.u32 %s1575_s18, 4  ;;  %s1766_s15 = sld [smem:[#allocation30_spill]]  ;;  %s1610_s11 = int_to_ptr.vmem [resolvable:$true] %s614_s11 }
 0x246   : > { %789 = vmatpush3.bf16.msra.mxu0 %v959_v62  ;;  %s1616_s3 = scalar_lea.sflag [#allocation5], %s370_s20  ;;  %s1049_s23 = scalar_lea.vmem %s1610_s11, 256 }
 0x247   : > { %790 = vmatprep.subr.bf16.mxu0 %v1213_v63  ;;  %p1050_p11 = scmp.ne.s32.totalorder %s1610_s11, %s1049_s23  ;;  %p1767_p9 = scmp.ne.s32.totalorder %s1744_s27, 0 }
 0x248   : > { %s1215_s2 = smov [#allocation9]  }
 0x249   : > { %p1051_p12 = pnand %p1050_p11, %p1767_p9  ;;  %s1053_s10 = sshll.u32 %s1215_s2, 4  ;;  %s1054_s10 = int_to_ptr.vmem [resolvable:$false] %s1053_s10 }
 0x24a   : > { %791 = vmatpush3.bf16.msra.mxu0 %v960_v0  ;;  %v527_v1 = vld [vmem:[#allocation2] sm:$0xff]  ;;  %s773_s6 = sshll.u32 %s1763_s0, 2  ;;  %s1055_s22 = scalar_lea.vmem %s1054_s10, 512 }
 0x24b   : > { %s611_s29 = sadd.s32 %s1764_s17, %s773_s6  ;;  %p1052_p6 = pneg %p1051_p12 }
 0x24c   : > { %s769_s7 = sshll.u32 %s611_s29, 7  ;;  %p1056_p5 = scmp.lt.s32.totalorder %s1610_s11, %s1054_s10 }
 0x24d   : > { %793 = vmatmul.mubr.msk.bf16.vlgmr.msra.gmra.mrb[0].mxu0 %vm551_vm3, %v527_v1  ;;  %s1608_s4 = scalar_lea.hbm %s1766_s15, %s769_s7  ;;  %p1057_p4 = scmp.lt.s32.totalorder %s1055_s22, %s1049_s23 }
 0x24f   : > { %p1058_p10 = por %p1057_p4, %p1056_p5 }
 0x251   : > { %p1059_p8 = pnand %p1058_p10, %p1052_p6 }
 0x320   : > { %v589_v3 = vpop.f32.mrb[0].mxu0 }
 0x321   : > { %v590_v4 = vadd.f32 %v762_v2, %v589_v3  ;;  %v794_v5 = vpop.f32.mrb[1].mxu0 }
 0x322   : > { %v592_v6 = vpop.f32.mrb[2].mxu0 }
 0x323   : > { %596 = vst [vmem:[%s1575_s18] sm:$0xff] %v590_v4  ;;  %v593_v7 = vadd.f32 %v762_v2, %v592_v6  ;;  %v795_v8 = vpop.f32.mrb[3].mxu0 }
 0x325   : > { %597 = vst [vmem:[%s1575_s18 + $0x8] sm:$0xff] %v593_v7 }
 0x326   : > { %1062 = shalt.err (!%p1059_p8)
}
 0x327   : > { %s1063_s20 = scalar_lea.hbm %s1608_s4, 256  ;;  %s1067_s0 = scalar_lea.hbm %s1766_s15, 1024 }
 0x328   : > { %p1064_p2 = scmp.ne.s32.totalorder %s1608_s4, %s1063_s20  ;;  %p1068_p7 = scmp.lt.u32.totalorder %s1608_s4, %s1766_s15 }
 0x329   : > { %p1069_p1 = scmp.lt.u32.totalorder %s1067_s0, %s1063_s20  ;;  %p1071_p11 = scmp.lt.u32.totalorder %s1063_s20, %s1608_s4 }
 0x32a   : > { %p1065_p0 = pnand %p1064_p2, %p1767_p9 }
 0x32b   : > { %p1070_p3 = por %p1069_p1, %p1068_p7 }
 0x32c   : > { %p1066_p13 = pneg %p1065_p0 }
 0x32d   : > { %p1072_p12 = por %p1071_p11, %p1070_p3 }
 0x32f   : > { %p1073_p6 = pnand %p1072_p12, %p1066_p13 }
 0x331   : > { %1076 = shalt.err (!%p1073_p6)
}
 0x332   : > { %s1216_s29 = smov 128   ;;  %s1217_s9 = smov 256  }
 0x333   : > { %s1218_s16 = smov 8  }
 0x334   : > { %804 = dma.vmem_to_hbm [thread:$0]  (%p1767_p9), %s1610_s11, 256, %s1608_s4, %s1616_s3, %s1216_s29, %s1217_s9, %s1218_s16  }
 0x335 PF: > { %p824_p5 = scmp.ge.s32.totalorder %s1203_s14, 2  ;;  %s629_s30 = sand.u32 1, %s1151_s24  }
 0x336   : > { %p1768_p4 = scmp.ne.s32.totalorder %s1745_s19, 0  ;;  %s630_s7 = scalar_lea.sflag [#allocation5], %s629_s30 }
 0x338   : > { %p818_p10 = pnand %p824_p5, %p1768_p4 }
 0x33a   : > { %1146 = dma.done.wait (!%p818_p10), %s630_s7, 256  }
 0x33b   : > { %1148 = vsyncadd (!%p818_p10), %s630_s7, 4294967040  ;;  %s24_s14 = sadd.s32 1, %s1203_s14   ;;  %s1770_s27 = sld [smem:[#allocation23_spill]] }
 0x33c   : > { %p1645_p8 = scmp.ge.s32.totalorder %s24_s14, 6   ;;  %s1771_s11 = sld [smem:[#allocation14_spill]] }
 0x33d   : > { %s1772_s29 = sld [smem:[#allocation24_spill]]  ;;  %s1773_s12 = sld [smem:[#allocation15_spill]] }
 0x33e   : > { %s1774_s9 = sld [smem:[#allocation22_spill]]  ;;  %s1775_s10 = sld [smem:[#allocation18_spill]] }
 0x33f   : > { %s1776_s19 = sld [smem:[#allocation19_spill]]  ;;  %s1777_s4 = sld [smem:[#allocation20_spill]] }
 0x340   : > { %s1778_s3 = sld [smem:[#allocation21_spill]]  ;;  %s1780_s24 = smov %s1155_s25 }
 0x341   : > { %s1781_s25 = smov %s1159_s26  ;;  %s1782_s26 = smov %s1770_s27 }
 0x342   : > { %s1783_s27 = smov %s1167_s28  ;;  %s1784_s28 = smov %s1771_s11 }
 0x343   : > { %s1785_s30 = smov %s1179_s8  ;;  %s1786_s8 = smov %s1773_s12 }
 0x344   :  { %23 = sbr.rel (!%p1645_p8) target bundleno = 18 (0x12), region = 115 }
 0x345   : > { %s1787_s11 = smov %s1776_s19  ;;  %s1788_s12 = smov %s1777_s4 }
 0x346   : > { %s1789_s13 = smov %s1778_s3 }
 0x34b   :  { %635 = vsyncpa [#allocation4], 1 }
 0x34c   :  { %637 = vsyncpa [#allocation4 + $0x1], 1 }
 0x34d   :  { %638 = vsyncpa [#allocation7], 1 }
 0x34e   :  { %639 = vsyncpa [#allocation5], 1 }
 0x34f   :  { %641 = vsyncpa [#allocation5 + $0x1], 1 }

// kernel: tpu_custom_call.1
= control target key start
LH: loop header
LB: loop body
LE: loop exit
PB: predicated region body
PF: predicated region fallthrough
CT: control target
= control target key end

     0   :  { %s1692_s0 = inlined_call_operand.hbm [shape: bf16[32,32], index: 0, kind: input, shape index: {}]   ;;  %s1693_s1 = inlined_call_operand.hbm [shape: bf16[32,32], index: 1, kind: input, shape index: {}]   ;;  %s1694_s2 = inlined_call_operand.vmem [shape: f32[1,32], index: 2, kind: input, shape index: {}]   ;;  %s1695_s3 = inlined_call_operand.vmem [shape: f32[1,32], index: 3, kind: input, shape index: {}]   ;;  %s1696_s4 = inlined_call_operand.vmem [shape: f32[1,32], index: 4, kind: input, shape index: {}]   ;;  %s1697_s5 = inlined_call_operand.hbm [shape: bf16[32,256], index: 5, kind: input, shape index: {}]   ;;  %s1698_s6 = inlined_call_operand.vmem [shape: f32[1,256], index: 6, kind: input, shape index: {}]   ;;  %s1699_s7 = inlined_call_operand.hbm [shape: f32[32,256], index: 7, kind: output, shape index: {}]  }
   0x1   :  { %1720 = sst [smem:[#allocation25_spill]] %s1692_s0 }
   0x2   :  { %1721 = sst [smem:[#allocation26_spill]] %s1694_s2 }
   0x3   :  { %1722 = sst [smem:[#allocation27_spill]] %s1695_s3 }
   0x4   :  { %1723 = sst [smem:[#allocation28_spill]] %s1696_s4 }
   0x5   :  { %1724 = sst [smem:[#allocation29_spill]] %s1698_s6 }
   0x6   :  { %1725 = sst [smem:[#allocation30_spill]] %s1699_s7 }
   0x7   :  { %12 = vsyncpa [#allocation4], 0 }
   0x8   :  { %14 = vsyncpa [#allocation4 + $0x1], 0 }
   0x9   :  { %15 = vsyncpa [#allocation7], 0 }
   0xa   :  { %16 = vsyncpa [#allocation5], 0 }
   0xb   :  { %18 = vsyncpa [#allocation5 + $0x1], 0  ;;  %s1259_s24 = smov 0   ;;  %s1261_s25 = smov 0  }
   0xc   :  { %s1263_s26 = smov 0   ;;  %s1265_s27 = smov 0  }
   0xd   :  { %s1267_s28 = smov 0   ;;  %s1269_s29 = smov 0  }
   0xe   :  { %s1271_s30 = smov 0   ;;  %s1273_s8 = smov 0  }
   0xf   :  { %s1275_s9 = smov 0   ;;  %s1277_s10 = smov 0  }
  0x10   :  { %s1279_s11 = smov 0   ;;  %s1281_s12 = smov 0  }
  0x11   :  { %s1283_s13 = smov 0   ;;  %s1285_s14 = smov 0  }
  0x12 LB: > { %1726 = sst [smem:[#allocation14_spill]] %s1171_s29  ;;  %s33_s15 = sadd.s32 1, %s1195_s12  ;;  %s1203_s14 = sphi %s1285_s14, %s24_s14   ;;  %s1199_s13 = sphi %s1283_s13, %s1789_s13   ;;  %s1195_s12 = sphi %s1281_s12, %s1788_s12   ;;  %s1191_s11 = sphi %s1279_s11, %s1787_s11   ;;  %s1187_s10 = sphi %s1277_s10, %s1775_s10   ;;  %s1183_s9 = sphi %s1275_s9, %s1774_s9   ;;  %s1179_s8 = sphi %s1273_s8, %s1786_s8   ;;  %s1175_s30 = sphi %s1271_s30, %s1785_s30   ;;  %s1171_s29 = sphi %s1269_s29, %s1772_s29   ;;  %s1167_s28 = sphi %s1267_s28, %s1784_s28   ;;  %s1163_s27 = sphi %s1265_s27, %s1783_s27   ;;  %s1159_s26 = sphi %s1263_s26, %s1782_s26   ;;  %s1155_s25 = sphi %s1261_s25, %s1781_s25   ;;  %s1151_s24 = sphi %s1259_s24, %s1780_s24  }
  0x13   : > { %1727 = sst [smem:[#allocation15_spill]] %s1183_s9  ;;  %s36_s16 = sadd.s32 1, %s1199_s13 }
  0x14   : > { %1728 = sst [smem:[#allocation16_spill]] %s1187_s10  ;;  %p34_p0 = scmp.ge.s32.totalorder %s33_s15, 2 }
  0x15   : > { %1729 = sst [smem:[#allocation17_spill]] %s1191_s11  ;;  %s43_s17 = sadd.s32 1, %s1183_s9 }
  0x16   : > { %1730 = sst [smem:[#allocation18_spill]] %s1195_s12  ;;  %p50_p1 = scmp.ne.s32.totalorder %s1183_s9, %s1179_s8 }
  0x17   : > { %1731 = sst [smem:[#allocation19_spill]] %s1199_s13  ;;  %p1705_p2 = scmp.eq.s32.totalorder %s1203_s14, 0 }
  0x18   : > { %s1791_s15 = smov (%p34_p0, %s33_s15), 0  ;;  %s1793_s16 = smov (!%p34_p0, %s36_s16), %s1199_s13 }
  0x19   : > { %1732 = sst [smem:[#allocation20_spill]] %s1791_s15  ;;  %p1340_p3 = por %p1705_p2, %p50_p1 }
  0x1a   : > { %s1346_s19 = ssub.s32 %s1195_s12, %s1791_s15  ;;  %p38_p4 = scmp.ge.s32.totalorder %s1793_s16, 2 }
  0x1b   : > { %p151_p5 = scmp.eq.s32.totalorder %s1346_s19, 0  ;;  %s207_s20 = sadd.s32 1, %s1159_s26 }
  0x1c   : > { %s1795_s16 = smov (%p38_p4, %s1793_s16), 0  ;;  %p1704_p6 = scmp.lt.s32.totalorder %s1203_s14, 4 }
  0x1d   : > { %1734 = sst [smem:[#allocation21_spill]] %s1795_s16  ;;  %s40_s21 = ssub.s32 %s1199_s13, %s1795_s16 }
  0x1e   : > { %p41_p7 = scmp.eq.s32.totalorder %s40_s21, 0  ;;  %s204_s22 = sor.u32 %s1346_s19, %s40_s21 }
  0x1f   : > { %p205_p8 = scmp.eq.s32.totalorder %s204_s22, 0  ;;  %s266_s23 = sand.u32 1, %s1203_s14  }
  0x20   : > { %s1358_s7 = scalar_select %p41_p7, %s1183_s9, %s43_s17  }
  0x21   : > { %s1361_s15 = scalar_select %p205_p8, %s1159_s26, %s207_s20  }
  0x22   : > { %1735 = sst [smem:[#allocation22_spill]] %s1358_s7  ;;  %s268_s11 = sand.u32 1, %s1183_s9  }
  0x23   : > { %1736 = sst [smem:[#allocation23_spill]] %s1361_s15  ;;  %s744_s4 = sshll.u32 %s268_s11, 3 }
  0x24   : > { %s772_s3 = sshll.u32 %s1199_s13, 7  ;;  %s1737_s0 = sld [smem:[#allocation25_spill]] }
  0x25   : > { %s270_s16 = scalar_lea.vmem [#allocation3], %s744_s4  ;;  %p1374_p9 = pnand %p1704_p6, %p1340_p3 }
  0x26   : > { %s277_s21 = sshll.u32 %s270_s16, 4  ;;  %s1380_s11 = scalar_lea.sflag [#allocation4], %s266_s23  ;;  %s1378_s21 = int_to_ptr.vmem [resolvable:$true] %s277_s21 }
  0x27   : > { %p963_p11 = pneg %p1374_p9 }
  0x2a   : > { %s1368_s10 = scalar_lea.hbm %s1737_s0, %s772_s3  ;;  %s966_s6 = scalar_lea.hbm %s1737_s0, 256 }
  0x2b   : > { %s961_s2 = scalar_lea.hbm %s1368_s10, 128  ;;  %p967_p0 = scmp.lt.u32.totalorder %s1368_s10, %s1737_s0 }
  0x2c   : > { %p962_p10 = scmp.ne.s32.totalorder %s1368_s10, %s961_s2  ;;  %p968_p1 = scmp.lt.u32.totalorder %s966_s6, %s961_s2 }
  0x2d   : > { %p970_p4 = scmp.lt.u32.totalorder %s961_s2, %s1368_s10 }
  0x2e   : > { %p964_p12 = pnand %p963_p11, %p962_p10  ;;  %p969_p3 = por %p968_p1, %p967_p0 }
  0x30   : > { %p965_p13 = pneg %p964_p12  ;;  %p971_p7 = por %p970_p4, %p969_p3 }
  0x32   : > { %p972_p8 = pnand %p971_p7, %p965_p13 }
  0x34   : > { %975 = shalt.err (!%p972_p8)
}
  0x35   : > { %s976_s20 = scalar_lea.vmem %s1378_s21, 128  ;;  %s1205_s22 = smov [#allocation3]  }
  0x36   : > { %p977_p10 = scmp.ne.s32.totalorder %s1378_s21, %s976_s20  ;;  %s981_s23 = sshll.u32 %s1205_s22, 4  ;;  %s982_s23 = int_to_ptr.vmem [resolvable:$false] %s981_s23 }
  0x37   : > { %s983_s3 = scalar_lea.vmem %s982_s23, 256  ;;  %p984_p2 = scmp.lt.s32.totalorder %s1378_s21, %s982_s23 }
  0x38   : > { %p979_p12 = pnand %p977_p10, %p963_p11  ;;  %p985_p0 = scmp.lt.s32.totalorder %s983_s3, %s976_s20 }
  0x3a   : > { %p980_p6 = pneg %p979_p12  ;;  %p986_p1 = por %p985_p0, %p984_p2 }
  0x3c   : > { %p987_p3 = pnand %p986_p1, %p980_p6 }
  0x3e   : > { %990 = shalt.err (!%p987_p3)
}
  0x3f   : > { %s1706_s2 = smov 64   ;;  %s1708_s4 = smov 4  }
  0x40   : > { %813 = dma.hbm_to_vmem [thread:$0]  (!%p1374_p9), %s1368_s10, 128, %s1378_s21, %s1380_s11, %s1706_s2, %s1706_s2, %s1708_s4  }
  0x41   : > { %s1412_s6 = sadd.s32 4294967295, %s1203_s14   ;;  %s740_s16 = sadd.s32 4294967294, %s1203_s14  }
  0x42   : > { %p56_p2 = scmp.ne.s32.totalorder %s1179_s8, %s1175_s30  ;;  %p1714_p6 = scmp.eq.s32.totalorder %s1412_s6, 0 }
  0x43   : > { %s153_s18 = sadd.s32 1, %s1171_s29  ;;  %p160_p11 = scmp.ne.s32.totalorder %s1171_s29, %s1167_s28 }
  0x44   : > { %p1423_p13 = por %p1714_p6, %p56_p2  ;;  %p166_p4 = scmp.ne.s32.totalorder %s1167_s28, %s1163_s27 }
  0x45   : > { %s1432_s10 = scalar_select %p151_p5, %s1171_s29, %s153_s18  }
  0x46   : > { %s1739_s17 = scalar_select %p1423_p13, 1, 0 }
  0x47   : > { %1740 = sst [smem:[#allocation24_spill]] %s1432_s10  ;;  %p1741_p9 = scmp.eq.s32.totalorder %s1203_s14, 0 }
  0x48   : > { %p1442_p8 = por %p166_p4, %p1714_p6  ;;  %p217_p10 = scmp.ne.s32.totalorder %s1159_s26, %s1155_s25 }
  0x49   : > { %p1436_p7 = por %p160_p11, %p1741_p9  ;;  %p218_p12 = scmp.eq.s32.totalorder %s1412_s6, 3 }
  0x4a   : > { %s1743_s30 = scalar_select %p1442_p8, 1, 0 }
  0x4b   : > { %p223_p0 = scmp.ne.s32.totalorder %s1155_s25, %s1151_s24  ;;  %p224_p1 = scmp.eq.s32.totalorder %s740_s16, 3 }
  0x4c   : > { %p1451_p5 = por %p218_p12, %p217_p10  ;;  %p741_p3 = scmp.ge.s32.totalorder %s1203_s14, 1 }
  0x4d   : > { %p1456_p2 = por %p224_p1, %p223_p0  ;;  %p231_p11 = scmp.lt.s32.totalorder %s1203_s14, 5 }
  0x4e   : > { %s1744_s27 = scalar_select %p1451_p5, 1, 0 }
  0x4f   : > { %s1745_s19 = scalar_select %p1456_p2, 1, 0 }
  0x50   : > { %p1461_p4 = pnand %p741_p3, %p231_p11  ;;  %s1208_s22 = smov [#allocation6]  }
  0x51   : > { %s243_s23 = sshll.u32 %s1208_s22, 4  ;;  %p1747_p9 = scmp.lt.s32.totalorder %s1203_s14, 4  ;;  %s1465_s23 = int_to_ptr.vmem [resolvable:$true] %s243_s23 }
  0x52   : > { %s1746_s20 = scalar_select %p1461_p4, 1, 0 }
  0x53   : > { %p1471_p10 = pnand %p1747_p9, %p1436_p7  ;;  %p806_p12 = pneg %p1461_p4 }
  0x54   : > { %s289_s16 = sand.u32 1, %s1171_s29   ;;  %s748_s4 = sshll.u32 %s1195_s12, 6 }
  0x55   : > { %s1748_s3 = scalar_select %p1471_p10, 1, 0 }
  0x56   : > { %s747_s18 = sshll.u32 %s289_s16, 4  ;;  %p1480_p0 = pnand %p806_p12, %p1714_p6 }
  0x57   : > { %s291_s22 = scalar_lea.vmem [#allocation8], %s747_s18  ;;  %s1488_s7 = scalar_lea.hbm %s1697_s5, %s748_s4 }
  0x58   : > { %s297_s0 = sshll.u32 %s291_s22, 4  ;;  %s991_s15 = scalar_lea.hbm %s1693_s1, 256  ;;  %s1514_s0 = int_to_ptr.vmem [resolvable:$true] %s297_s0 }
  0x59   : > { %p992_p7 = scmp.ne.s32.totalorder %s1693_s1, %s991_s15  ;;  %p993_p1 = pneg %p1480_p0 }
  0x5a   : > { %p998_p9 = scmp.lt.u32.totalorder %s991_s15, %s1693_s1 }
  0x5b   : > { %p994_p3 = pnand %p993_p1, %p992_p7 }
  0x5d   : > { %p995_p11 = pneg %p994_p3 }
  0x5f   : > { %p1000_p12 = pnand %p998_p9, %p995_p11 }
  0x61   : > { %1003 = shalt.err (!%p1000_p12)
}
  0x62   : > { %s1004_s13 = scalar_lea.vmem %s1465_s23, 256  ;;  %p1012_p8 = scmp.lt.s32.totalorder %s1465_s23, %s1465_s23 }
  0x63   : > { %p1005_p6 = scmp.ne.s32.totalorder %s1465_s23, %s1004_s13  ;;  %p1013_p13 = scmp.lt.s32.totalorder %s1004_s13, %s1004_s13 }
  0x65   : > { %p1007_p2 = pnand %p1005_p6, %p993_p1  ;;  %p1014_p4 = por %p1013_p13, %p1012_p8 }
  0x67   : > { %p1008_p5 = pneg %p1007_p2 }
  0x69   : > { %p1015_p10 = pnand %p1014_p4, %p1008_p5 }
  0x6b   : > { %1018 = shalt.err (!%p1015_p10)
}
  0x6c   : > { %s1750_s29 = smov 4   ;;  %s1751_s9 = smov 64  }
  0x6d   : > { %809 = dma.hbm_to_vmem [thread:$0]  (!%p1480_p0), %s1693_s1, 256, %s1465_s23, [#allocation7], %s1751_s9, %s1751_s9, %s1750_s29  }
  0x6e   : > { %s1019_s4 = scalar_lea.hbm %s1488_s7, 256  ;;  %p1752_p13 = scmp.ne.s32.totalorder %s1748_s3, 0 }
  0x6f   : > { %p1020_p6 = scmp.ne.s32.totalorder %s1488_s7, %s1019_s4  ;;  %s1024_s22 = scalar_lea.hbm %s1697_s5, 512 }
  0x70   : > { %p1021_p8 = pneg %p1752_p13  ;;  %p1025_p4 = scmp.lt.u32.totalorder %s1488_s7, %s1697_s5 }
  0x71   : > { %p1026_p10 = scmp.lt.u32.totalorder %s1024_s22, %s1019_s4  ;;  %p1028_p7 = scmp.lt.u32.totalorder %s1019_s4, %s1488_s7 }
  0x72   : > { %p1022_p5 = pnand %p1021_p8, %p1020_p6 }
  0x73   : > { %p1027_p0 = por %p1026_p10, %p1025_p4 }
  0x74   : > { %p1023_p2 = pneg %p1022_p5 }
  0x75   : > { %p1029_p1 = por %p1028_p7, %p1027_p0 }
  0x77   : > { %p1030_p3 = pnand %p1029_p1, %p1023_p2 }
  0x79   : > { %1033 = shalt.err (!%p1030_p3)
}
  0x7a   : > { %s1034_s23 = scalar_lea.vmem %s1514_s0, 256  ;;  %s1209_s18 = smov [#allocation8]  }
  0x7b   : > { %p1035_p11 = scmp.ne.s32.totalorder %s1514_s0, %s1034_s23  ;;  %s1039_s13 = sshll.u32 %s1209_s18, 4  ;;  %s1040_s13 = int_to_ptr.vmem [resolvable:$false] %s1039_s13 }
  0x7c   : > { %s1041_s12 = scalar_lea.vmem %s1040_s13, 512  ;;  %p1042_p6 = scmp.lt.s32.totalorder %s1514_s0, %s1040_s13 }
  0x7d   : > { %p1037_p9 = pnand %p1035_p11, %p1021_p8  ;;  %p1043_p5 = scmp.lt.s32.totalorder %s1041_s12, %s1034_s23 }
  0x7f   : > { %p1038_p12 = pneg %p1037_p9  ;;  %p1044_p4 = por %p1043_p5, %p1042_p6 }
  0x81   : > { %p1045_p10 = pnand %p1044_p4, %p1038_p12 }
  0x83   : > { %1048 = shalt.err (!%p1045_p10)
}
  0x84   : > { %s1210_s15 = smov 128   ;;  %p1753_p8 = scmp.ne.s32.totalorder %s1746_s20, 0 }
  0x85   : > { %816 = dma.hbm_to_vmem [thread:$0]  (!%p1752_p13), %s1488_s7, 256, %s1514_s0, %s1380_s11, %s1210_s15, %s1751_s9, %s1750_s29  }
  0x86   : > { %315 = sbr.rel (%p1753_p8) target bundleno = 821 (0x335), region = 48  ;;  %s317_s4 = sand.u32 (!%p1753_p8), 1, %s1412_s6  }
  0x87   : > { %s319_s2 = sand.u32 (!%p1753_p8), 1, %s1179_s8   ;;  %s318_s22 = scalar_lea.sflag (!%p1753_p8), [#allocation4], %s317_s4 }
  0x88   : > { %s750_s10 = sshll.u32 (!%p1753_p8), %s319_s2, 3  ;;  %p1754_p2 = scmp.ne.s32.totalorder (!%p1753_p8), %s1739_s17, 0 }
  0x89   : > { %s321_s21 = scalar_lea.vmem (!%p1753_p8), [#allocation3], %s750_s10 }
  0x8d   : > { %1134 = dma.done.wait (%p1754_p2), %s318_s22, 128  }
  0x8e   : > { %1136 = vsyncadd (%p1754_p2), %s318_s22, 4294967168  ;;  %p1755_p0 = scmp.eq.s32.totalorder %s1412_s6, 0 }
  0x90   : > { %1138 = dma.done.wait (%p1755_p0), [#allocation7], 256   ;;  %p1756_p13 = pmov %p1755_p0 }
  0x91   : > { %s332_s0 = sand.u32 1, %s1167_s28   ;;  %p1757_p7 = scmp.ne.s32.totalorder %s1743_s30, 0 }
  0x92   : > { %1140 = vsyncadd (%p1756_p13), [#allocation7], 4294967040  ;;  %s1557_s7 = sshll.u32 %s332_s0, 4 }
  0x93   : > { %s334_s11 = scalar_lea.vmem [#allocation8], %s1557_s7 }
  0x94   : > { %1142 = dma.done.wait (%p1757_p7), %s318_s22, 256  }
  0x95   : > { %1144 = vsyncadd (%p1757_p7), %s318_s22, 4294967040  ;;  %s1758_s17 = sld [smem:[#allocation16_spill]]  ;;  %s370_s20 = sand.u32 1, %s1155_s25  }
  0x96   : > { %s753_s6 = sshll.u32 %s370_s20, 4  ;;  %s1759_s16 = sld [smem:[#allocation29_spill]] }
  0x97   : > { %s1575_s18 = scalar_lea.vmem [#allocation9], %s753_s6 }
  0x9b   : > { %p374_p1 = scmp.lt.s32.totalorder %s1758_s17, 1  ;;  %p754_p3 = scmp.ne.s32.totalorder %s1758_s17, 0 }
  0x9c   : > { %v948_v0 = vld [vmem:[#allocation6] sm:$0xff] (!%p754_p3)   ;;  %v1211_v1 = vmov (!%p754_p3), 0.0   ;;  %v949_v2 = vld [vmem:[#allocation6 + $0x8] sm:$0xff] (!%p754_p3)   ;;  %vm1212_vm0 = vmmov (!%p754_p3), 0   ;;  %v950_v3 = vld [vmem:[%s321_s21] sm:$0xff] (!%p754_p3)   ;;  %vm413_vm1 = vcmask (!%p754_p3), 261120  }
  0x9d   : > { %s1569_s3 = scalar_select %p374_p1, %s1758_s17, 1 }
  0x9e   : > { %382 = sbr.rel (%p754_p3) target bundleno = 580 (0x244), region = 64  ;;  %780 = vmatprep.subr.bf16.mxu0 (!%p754_p3), %v1211_v1  ;;  %784 = vmatprep.mubr.msk.bf16.mxu0 (!%p754_p3), %vm1212_vm0, %v1211_v1  ;;  %s1760_s12 = sld [smem:[#allocation26_spill]] (!%p754_p3) }
  0x9f   : > { %s376_s23 = scalar_lea.vmem %s1759_s16, %s1569_s3  ;;  %781 = vmatpush3.bf16.msra.mxu0 (!%p754_p3), %v948_v0  ;;  %s1761_s2 = sld [smem:[#allocation27_spill]] (!%p754_p3) }
  0xa0   : > { %782 = vmatprep.subr.bf16.mxu0 (!%p754_p3), %v1211_v1  ;;  %s1762_s21 = sld [smem:[#allocation28_spill]] (!%p754_p3) }
  0xa3   : > { %783 = vmatpush3.bf16.msra.mxu0 (!%p754_p3), %v949_v2 }
  0xa4   : > { %v755_v4 = vld [vmem:[%s1760_s12] ss:$0 sm:$0xff] (!%p754_p3) }
  0xa5   : > { %v760_v52 = vld [vmem:[%s1761_s2] ss:$0 sm:$0xff] }
  0xa6   : > { %785 = vmatmul.mubr.msk.bf16.vlgmr.msra.gmra.mrb[0].mxu0 %vm413_vm1, %v950_v3  ;;  %v761_v57 = vld [vmem:[%s1762_s21] ss:$0 sm:$0xff] }
 0x179   : > { %v451_v5 = vpop.f32.mrb[0].mxu0 }
 0x17a   : > { %v452_v6 = vadd.f32 %v755_v4, %v451_v5  ;;  %v786_v7 = vpop.f32.mrb[1].mxu0 }
 0x17b   : > { %v454_v8 = vpop.f32.mrb[2].mxu0 }
 0x17c   : > { %v460_v9 = vmul.f32 0.044715, %v452_v6  ;;  %v455_v10 = vadd.f32 %v755_v4, %v454_v8  ;;  %v787_v11 = vpop.f32.mrb[3].mxu0  ;;  %v458_v22 = vmul.f32 0.5, %v452_v6 }
 0x17e   : > { %v462_v12 = vmul.f32 %v460_v9, %v452_v6  ;;  %v461_v13 = vmul.f32 0.044715, %v455_v10  ;;  %v459_v26 = vmul.f32 0.5, %v455_v10 }
 0x180   : > { %v463_v14 = vmul.f32 %v461_v13, %v455_v10  ;;  %v464_v15 = vmul.f32 %v462_v12, %v452_v6 }
 0x182   : > { %v466_v16 = vadd.f32 %v464_v15, %v452_v6  ;;  %v465_v17 = vmul.f32 %v463_v14, %v455_v10 }
 0x184   : > { %v468_v18 = vmul.f32 0.7978846, %v466_v16  ;;  %v467_v19 = vadd.f32 %v465_v17, %v455_v10 }
 0x186   : > { %951 = vtanh.f32 %v468_v18  ;;  %v469_v20 = vmul.f32 0.7978846, %v467_v19 }
 0x188   : > { %953 = vtanh.f32 %v469_v20 }
 0x190   : > { %v952_v21 = vpop.eup %951 }
 0x191   : > { %v472_v23 = vadd.f32 1.0, %v952_v21 }
 0x192   : > { %v954_v24 = vpop.eup %953 }
 0x193   : > { %v474_v25 = vmul.f32 %v472_v23, %v458_v22  ;;  %v473_v27 = vadd.f32 1.0, %v954_v24 }
 0x195   : > { %v476_v28 = vsel %vm413_vm1, %v474_v25, 0.0  ;;  %v485_v29 = vmul.f32 %v474_v25, %v474_v25  ;;  %v475_v30 = vmul.f32 %v473_v27, %v459_v26 }
 0x196   : > { %477 = vadd.xlane.f32.xlu0 %v476_v28 }
 0x197   : > { %v487_v31 = vsel %vm413_vm1, %v485_v29, 0.0  ;;  %v486_v32 = vmul.f32 %v475_v30, %v475_v30  ;;  %v479_v33 = vsel %vm413_vm1, %v475_v30, 0.0 }
 0x198   : > { %488 = vadd.xlane.f32.xlu1 %v487_v31 }
 0x199   : > { %v490_v34 = vsel %vm413_vm1, %v486_v32, 0.0 }
 0x19a   : > { %480 = vadd.xlane.f32.xlu0 %v479_v33 }
 0x19c   : > { %491 = vadd.xlane.f32.xlu1 %v490_v34 }
 0x223   : > { %v478_v35 = vpop.xlane.xlu0 %477 }
 0x224   : > { %v483_v36 = vmul.f32 0.03125, %v478_v35 }
 0x225   : > { %v489_v37 = vpop.xlane.xlu1 %488 }
 0x226   : > { %v495_v38 = vmul.f32 %v483_v36, %v483_v36  ;;  %v493_v39 = vmul.f32 0.03125, %v489_v37  ;;  %v499_v49 = vsub.f32 %v474_v25, %v483_v36 }
 0x227   : > { %v481_v40 = vpop.xlane.xlu0 %480 }
 0x228   : > { %v497_v41 = vsub.f32 %v493_v39, %v495_v38  ;;  %v484_v42 = vmul.f32 0.03125, %v481_v40 }
 0x229   : > { %v492_v43 = vpop.xlane.xlu1 %491 }
 0x22a   : > { %v501_v44 = vadd.f32 1e-12, %v497_v41  ;;  %v496_v45 = vmul.f32 %v484_v42, %v484_v42  ;;  %v494_v46 = vmul.f32 0.03125, %v492_v43  ;;  %v500_v53 = vsub.f32 %v475_v30, %v484_v42 }
 0x22c   : > { %955 = vrsqrt.f32 %v501_v44  ;;  %v498_v47 = vsub.f32 %v494_v46, %v496_v45 }
 0x22e   : > { %v502_v48 = vadd.f32 1e-12, %v498_v47 }
 0x230   : > { %957 = vrsqrt.f32 %v502_v48 }
 0x236   : > { %v956_v50 = vpop.eup %955 }
 0x237   : > { %v505_v51 = vmul.f32 %v956_v50, %v499_v49 }
 0x239   : > { %v514_v55 = vmul.f32 %v760_v52, %v505_v51 }
 0x23a   : > { %v958_v54 = vpop.eup %957 }
 0x23b   : > { %v506_v56 = vmul.f32 %v958_v54, %v500_v53  ;;  %v523_v59 = vadd.f32 %v761_v57, %v514_v55 }
 0x23d   : > { %v515_v58 = vmul.f32 %v760_v52, %v506_v56 }
 0x23f   : > { %v524_v60 = vadd.f32 %v761_v57, %v515_v58 }
 0x241   : > { %v525_v61 = vpack.c.bf16 %v524_v60, %v523_v59 }
 0x243   : > { %526 = vst.msk [vmem:[#allocation2] sm:$0xff] %vm413_vm1, %v525_v61 }
 0x244 PF: > { %s1763_s0 = sld [smem:[#allocation17_spill]]  ;;  %s1764_s17 = sld [smem:[#allocation16_spill]]  ;;  %v959_v62 = vld [vmem:[%s334_s11] sm:$0xff]   ;;  %v1213_v63 = vmov 0.0   ;;  %v960_v0 = vld [vmem:[%s334_s11 + $0x8] sm:$0xff]   ;;  %vm1214_vm2 = vmmov 0  }
 0x245   : > { %788 = vmatprep.subr.bf16.mxu0 %v1213_v63  ;;  %792 = vmatprep.mubr.msk.bf16.mxu0 %vm1214_vm2, %v1213_v63  ;;  %vm551_vm3 = vcmask 261120   ;;  %v762_v2 = vld [vmem:[%s376_s23] ss:$0 sm:$0xff]  ;;  %s614_s11 = sshll.u32 %s1575_s18, 4  ;;  %s1766_s15 = sld [smem:[#allocation30_spill]]  ;;  %s1610_s11 = int_to_ptr.vmem [resolvable:$true] %s614_s11 }
 0x246   : > { %789 = vmatpush3.bf16.msra.mxu0 %v959_v62  ;;  %s1616_s3 = scalar_lea.sflag [#allocation5], %s370_s20  ;;  %s1049_s23 = scalar_lea.vmem %s1610_s11, 256 }
 0x247   : > { %790 = vmatprep.subr.bf16.mxu0 %v1213_v63  ;;  %p1050_p11 = scmp.ne.s32.totalorder %s1610_s11, %s1049_s23  ;;  %p1767_p9 = scmp.ne.s32.totalorder %s1744_s27, 0 }
 0x248   : > { %s1215_s2 = smov [#allocation9]  }
 0x249   : > { %p1051_p12 = pnand %p1050_p11, %p1767_p9  ;;  %s1053_s10 = sshll.u32 %s1215_s2, 4  ;;  %s1054_s10 = int_to_ptr.vmem [resolvable:$false] %s1053_s10 }
 0x24a   : > { %791 = vmatpush3.bf16.msra.mxu0 %v960_v0  ;;  %v527_v1 = vld [vmem:[#allocation2] sm:$0xff]  ;;  %s773_s6 = sshll.u32 %s1763_s0, 2  ;;  %s1055_s22 = scalar_lea.vmem %s1054_s10, 512 }
 0x24b   : > { %s611_s29 = sadd.s32 %s1764_s17, %s773_s6  ;;  %p1052_p6 = pneg %p1051_p12 }
 0x24c   : > { %s769_s7 = sshll.u32 %s611_s29, 7  ;;  %p1056_p5 = scmp.lt.s32.totalorder %s1610_s11, %s1054_s10 }
 0x24d   : > { %793 = vmatmul.mubr.msk.bf16.vlgmr.msra.gmra.mrb[0].mxu0 %vm551_vm3, %v527_v1  ;;  %s1608_s4 = scalar_lea.hbm %s1766_s15, %s769_s7  ;;  %p1057_p4 = scmp.lt.s32.totalorder %s1055_s22, %s1049_s23 }
 0x24f   : > { %p1058_p10 = por %p1057_p4, %p1056_p5 }
 0x251   : > { %p1059_p8 = pnand %p1058_p10, %p1052_p6 }
 0x320   : > { %v589_v3 = vpop.f32.mrb[0].mxu0 }
 0x321   : > { %v590_v4 = vadd.f32 %v762_v2, %v589_v3  ;;  %v794_v5 = vpop.f32.mrb[1].mxu0 }
 0x322   : > { %v592_v6 = vpop.f32.mrb[2].mxu0 }
 0x323   : > { %596 = vst [vmem:[%s1575_s18] sm:$0xff] %v590_v4  ;;  %v593_v7 = vadd.f32 %v762_v2, %v592_v6  ;;  %v795_v8 = vpop.f32.mrb[3].mxu0 }
 0x325   : > { %597 = vst [vmem:[%s1575_s18 + $0x8] sm:$0xff] %v593_v7 }
 0x326   : > { %1062 = shalt.err (!%p1059_p8)
}
 0x327   : > { %s1063_s20 = scalar_lea.hbm %s1608_s4, 256  ;;  %s1067_s0 = scalar_lea.hbm %s1766_s15, 1024 }
 0x328   : > { %p1064_p2 = scmp.ne.s32.totalorder %s1608_s4, %s1063_s20  ;;  %p1068_p7 = scmp.lt.u32.totalorder %s1608_s4, %s1766_s15 }
 0x329   : > { %p1069_p1 = scmp.lt.u32.totalorder %s1067_s0, %s1063_s20  ;;  %p1071_p11 = scmp.lt.u32.totalorder %s1063_s20, %s1608_s4 }
 0x32a   : > { %p1065_p0 = pnand %p1064_p2, %p1767_p9 }
 0x32b   : > { %p1070_p3 = por %p1069_p1, %p1068_p7 }
 0x32c   : > { %p1066_p13 = pneg %p1065_p0 }
 0x32d   : > { %p1072_p12 = por %p1071_p11, %p1070_p3 }
 0x32f   : > { %p1073_p6 = pnand %p1072_p12, %p1066_p13 }
 0x331   : > { %1076 = shalt.err (!%p1073_p6)
}
 0x332   : > { %s1216_s29 = smov 128   ;;  %s1217_s9 = smov 256  }
 0x333   : > { %s1218_s16 = smov 8  }
 0x334   : > { %804 = dma.vmem_to_hbm [thread:$0]  (%p1767_p9), %s1610_s11, 256, %s1608_s4, %s1616_s3, %s1216_s29, %s1217_s9, %s1218_s16  }
 0x335 PF: > { %p824_p5 = scmp.ge.s32.totalorder %s1203_s14, 2  ;;  %s629_s30 = sand.u32 1, %s1151_s24  }
 0x336   : > { %p1768_p4 = scmp.ne.s32.totalorder %s1745_s19, 0  ;;  %s630_s7 = scalar_lea.sflag [#allocation5], %s629_s30 }
 0x338   : > { %p818_p10 = pnand %p824_p5, %p1768_p4 }
 0x33a   : > { %1146 = dma.done.wait (!%p818_p10), %s630_s7, 256  }
 0x33b   : > { %1148 = vsyncadd (!%p818_p10), %s630_s7, 4294967040  ;;  %s24_s14 = sadd.s32 1, %s1203_s14   ;;  %s1770_s27 = sld [smem:[#allocation23_spill]] }
 0x33c   : > { %p1645_p8 = scmp.ge.s32.totalorder %s24_s14, 6   ;;  %s1771_s11 = sld [smem:[#allocation14_spill]] }
 0x33d   : > { %s1772_s29 = sld [smem:[#allocation24_spill]]  ;;  %s1773_s12 = sld [smem:[#allocation15_spill]] }
 0x33e   : > { %s1774_s9 = sld [smem:[#allocation22_spill]]  ;;  %s1775_s10 = sld [smem:[#allocation18_spill]] }
 0x33f   : > { %s1776_s19 = sld [smem:[#allocation19_spill]]  ;;  %s1777_s4 = sld [smem:[#allocation20_spill]] }
 0x340   : > { %s1778_s3 = sld [smem:[#allocation21_spill]]  ;;  %s1780_s24 = smov %s1155_s25 }
 0x341   : > { %s1781_s25 = smov %s1159_s26  ;;  %s1782_s26 = smov %s1770_s27 }
 0x342   : > { %s1783_s27 = smov %s1167_s28  ;;  %s1784_s28 = smov %s1771_s11 }
 0x343   : > { %s1785_s30 = smov %s1179_s8  ;;  %s1786_s8 = smov %s1773_s12 }
 0x344   :  { %23 = sbr.rel (!%p1645_p8) target bundleno = 18 (0x12), region = 115 }
 0x345   : > { %s1787_s11 = smov %s1776_s19  ;;  %s1788_s12 = smov %s1777_s4 }
 0x346   : > { %s1789_s13 = smov %s1778_s3 }
 0x34b   :  { %635 = vsyncpa [#allocation4], 1 }
 0x34c   :  { %637 = vsyncpa [#allocation4 + $0x1], 1 }
 0x34d   :  { %638 = vsyncpa [#allocation7], 1 }
 0x34e   :  { %639 = vsyncpa [#allocation5], 1 }
 0x34f   :  { %641 = vsyncpa [#allocation5 + $0x1], 1 }

</bundles_post_ra>
